<compile_context>
chip_gen: v6e
topology: v6e:2x2x1
jax: 0.10.0
libtpu: 0.0.40
codegen_flags: <defaults>
</compile_context>

<pallas_src>
import jax
import jax.numpy as jnp
from jax.experimental import pallas as pl
from jax.experimental.pallas import tpu as pltpu


def _se_scale_kernel(xse_ref, w_ref, b_ref, x_ref, o_ref):
    # xse_ref : (Cin, 1)      bf16
    # w_ref   : (TILE_C, Cin) bf16
    # b_ref   : (TILE_C, 1)   f32
    # x_ref   : (TILE_C, HW)  f32
    # o_ref   : (TILE_C, HW)  f32
    # 1x1 conv on a 1x1 spatial input == mat-vec on the MXU, f32 accumulate.
    s = jnp.dot(w_ref[...], xse_ref[...],
                preferred_element_type=jnp.float32)        # (TILE_C, 1)
    s = s + b_ref[...]
    gate = jax.nn.sigmoid(s)                               # EUP path, (TILE_C, 1)
    # gate broadcasts along lanes (stride-0 read) against the activation tile.
    o_ref[...] = (gate * x_ref[...]).astype(o_ref.dtype)


def _default_num_tiles():
    """2 grid steps on single-TC chips; 4 on v7x (2 TensorCores x 2 steps)."""
    try:
        kind = jax.devices()[0].device_kind.lower()
    except Exception:
        kind = ""
    return 4 if "v7" in kind else 2


def se_conv_sigmoid_mul(x_se, weight, bias, x_main, *, tile_c=None):
    """x_se: (1, Cin, 1, 1); weight: (Cout, Cin, 1, 1); bias: (Cout,);
    x_main: (1, Cout, H, W). Returns (1, Cout, H, W)."""
    n, cin, _, _ = x_se.shape
    _, cout, h, w = x_main.shape
    assert n == 1
    hw = h * w

    if tile_c is None:
        nt = _default_num_tiles()
        tile_c = cout // nt if (cout % nt == 0) else cout
    assert cout % tile_c == 0
    # Mosaic lowering: second-to-last block dim must be a multiple of 8
    # (16 for the bf16 weight tile's sublane packing) unless it spans Cout.
    assert tile_c == cout or tile_c % 16 == 0, "tile_c must be a multiple of 16"
    grid = (cout // tile_c,)

    # Weight/SE vector in bf16 (native MXU input dtype on v5e/v6e/v7x).
    # In a real model the weight cast is a one-time offline param prep.
    xse2 = x_se.reshape(cin, 1).astype(jnp.bfloat16)      # (Cin, 1)
    w2 = weight.reshape(cout, cin).astype(jnp.bfloat16)   # (Cout, Cin)
    b2 = bias.reshape(cout, 1).astype(jnp.float32)        # (Cout, 1)
    xm2 = x_main.reshape(cout, hw)                        # (Cout, HW)

    out2 = pl.pallas_call(
        _se_scale_kernel,
        out_shape=jax.ShapeDtypeStruct((cout, hw), x_main.dtype),
        grid_spec=pltpu.PrefetchScalarGridSpec(
            num_scalar_prefetch=0,
            grid=grid,
            in_specs=[
                pl.BlockSpec((cin, 1), lambda i: (0, 0)),        # SE vector (full)
                pl.BlockSpec((tile_c, cin), lambda i: (i, 0)),   # weight tile
                pl.BlockSpec((tile_c, 1), lambda i: (i, 0)),     # bias tile
                pl.BlockSpec((tile_c, hw), lambda i: (i, 0)),    # activation tile
            ],
            out_specs=pl.BlockSpec((tile_c, hw), lambda i: (i, 0)),
        ),
        compiler_params=pltpu.CompilerParams(
            dimension_semantics=("parallel",)),
    )(xse2, w2, b2, xm2)

    return out2.reshape(1, cout, h, w)


if __name__ == "__main__":
    key = jax.random.PRNGKey(0)
    k1, k2, k3, k4 = jax.random.split(key, 4)

    CIN, COUT, H, W = 96, 2304, 7, 7

    # Deterministic "parameters" (synthetic, not loaded from a checkpoint).
    weight = jax.random.normal(k1, (COUT, CIN, 1, 1), dtype=jnp.float32) * 0.02
    bias = jax.random.normal(k2, (COUT,), dtype=jnp.float32) * 0.02

    # Inputs matching the module's forward signature shapes.
    x968 = jax.random.normal(k3, (1, CIN, 1, 1), dtype=jnp.float32)   # SE vector
    x965 = jax.random.normal(k4, (1, COUT, H, W), dtype=jnp.float32)  # main act

    out = se_conv_sigmoid_mul(x968, weight, bias, x965)
    out = jax.block_until_ready(out)

    # Pure-JAX reference. The kernel quantizes weight & SE vector to bf16
    # (f32 accumulation), so quantize the reference the same way to keep the
    # tolerance tight and non-flaky.
    w_q = weight.reshape(COUT, CIN).astype(jnp.bfloat16).astype(jnp.float32)
    x_q = x968.reshape(CIN).astype(jnp.bfloat16).astype(jnp.float32)
    ref_s = w_q @ x_q + bias
    ref = jax.nn.sigmoid(ref_s).reshape(1, COUT, 1, 1) * x965
    assert out.shape == (1, COUT, H, W)
    assert jnp.allclose(out, ref, atol=1e-4, rtol=1e-4)

    # Sanity vs the full-f32 PyTorch-equivalent math (loose tol for bf16 weights).
    ref_full = jax.nn.sigmoid(
        weight.reshape(COUT, CIN) @ x968.reshape(CIN) + bias
    ).reshape(1, COUT, 1, 1) * x965
    assert jnp.allclose(out, ref_full, atol=1e-2, rtol=1e-2)

    print("KERNEL_OK")
</pallas_src>

<mosaic_0001>
module attributes {stable_mosaic.version = 11 : i64} {
  func.func @_se_scale_kernel(%arg0: i32, %arg1: memref<96x1xbf16, #tpu.memory_space<vmem>>, %arg2: memref<1152x96xbf16, #tpu.memory_space<vmem>>, %arg3: memref<1152x1xf32, #tpu.memory_space<vmem>>, %arg4: memref<1152x49xf32, #tpu.memory_space<vmem>>, %arg5: memref<1152x49xf32, #tpu.memory_space<vmem>>) attributes {dimension_semantics = [#tpu.dimension_semantics<parallel>], iteration_bounds = array<i64: 2>, scalar_prefetch = 0 : i64, scratch_operands = 0 : i64, tpu.core_type = #tpu.core_type<tc>, window_params = [{pipeline_mode = #tpu.pipeline_mode<synchronous>, transform_indices = @transform_0, window_bounds = array<i64: 96, 1>}, {transform_indices = @transform_1, window_bounds = array<i64: 1152, 96>}, {transform_indices = @transform_2, window_bounds = array<i64: 1152, 1>}, {transform_indices = @transform_3, window_bounds = array<i64: 1152, 49>}, {transform_indices = @transform_4, window_bounds = array<i64: 1152, 49>}]} {
    %c0 = arith.constant 0 : index
    %c0_0 = arith.constant 0 : index
    %0 = vector.load %arg2[%c0, %c0_0] : memref<1152x96xbf16, #tpu.memory_space<vmem>>, vector<1152x96xbf16>
    %c0_1 = arith.constant 0 : index
    %c0_2 = arith.constant 0 : index
    %1 = vector.load %arg1[%c0_1, %c0_2] : memref<96x1xbf16, #tpu.memory_space<vmem>>, vector<96x1xbf16>
    %cst = arith.constant dense<0.000000e+00> : vector<1152x1xf32>
    %2 = tpu.matmul %0, %1, %cst {dimension_numbers = #tpu.dot_dimension_numbers<[1], [0], [0], [1], [0, 0, 1, 1], [], []>} : vector<1152x96xbf16>, vector<96x1xbf16>, vector<1152x1xf32> -> vector<1152x1xf32>
    %c0_3 = arith.constant 0 : index
    %c0_4 = arith.constant 0 : index
    %3 = vector.load %arg3[%c0_3, %c0_4] : memref<1152x1xf32, #tpu.memory_space<vmem>>, vector<1152x1xf32>
    %4 = arith.addf %2, %3 : vector<1152x1xf32>
    %5 = arith.negf %4 : vector<1152x1xf32>
    %6 = math.exp %5 : vector<1152x1xf32>
    %cst_5 = arith.constant 1.000000e+00 : f32
    %7 = vector.broadcast %cst_5 : f32 to vector<1152x1xf32>
    %8 = arith.addf %7, %6 : vector<1152x1xf32>
    %9 = arith.divf %7, %8 : vector<1152x1xf32>
    %c0_6 = arith.constant 0 : index
    %c0_7 = arith.constant 0 : index
    %10 = vector.load %arg4[%c0_6, %c0_7] : memref<1152x49xf32, #tpu.memory_space<vmem>>, vector<1152x49xf32>
    %11 = vector.broadcast %9 : vector<1152x1xf32> to vector<1152x49xf32>
    %12 = arith.mulf %11, %10 : vector<1152x49xf32>
    %c0_8 = arith.constant 0 : index
    %c0_9 = arith.constant 0 : index
    %13 = vector.load %arg5[%c0_8, %c0_9] : memref<1152x49xf32, #tpu.memory_space<vmem>>, vector<1152x49xf32>
    tpu.vector_store %arg5[%c0_8, %c0_9], %12 {strides = array<i32>} : memref<1152x49xf32, #tpu.memory_space<vmem>>, vector<1152x49xf32>,
    return
  }
  func.func @transform_0(%arg0: i32) -> (i32, i32) {
    %c0_i32 = arith.constant 0 : i32
    %c0_i32_0 = arith.constant 0 : i32
    %c0_i32_1 = arith.constant 0 : i32
    return %c0_i32, %c0_i32_0 : i32, i32
  }
  func.func @transform_1(%arg0: i32) -> (i32, i32) {
    %c0_i32 = arith.constant 0 : i32
    %c0_i32_0 = arith.constant 0 : i32
    return %arg0, %c0_i32 : i32, i32
  }
  func.func @transform_2(%arg0: i32) -> (i32, i32) {
    %c0_i32 = arith.constant 0 : i32
    %c0_i32_0 = arith.constant 0 : i32
    return %arg0, %c0_i32 : i32, i32
  }
  func.func @transform_3(%arg0: i32) -> (i32, i32) {
    %c0_i32 = arith.constant 0 : i32
    %c0_i32_0 = arith.constant 0 : i32
    return %arg0, %c0_i32 : i32, i32
  }
  func.func @transform_4(%arg0: i32) -> (i32, i32) {
    %c0_i32 = arith.constant 0 : i32
    %c0_i32_0 = arith.constant 0 : i32
    return %arg0, %c0_i32 : i32, i32
  }
}

</mosaic_0001>

<bundles_post_ra>
// kernel: tpu_custom_call.1
= control target key start
LH: loop header
LB: loop body
LE: loop exit
PB: predicated region body
PF: predicated region fallthrough
CT: control target
= control target key end

     0   :  { %s5115_s15 = smov 0   ;;  %s6136_s0 = inlined_call_operand.vmem [shape: bf16[96,1], index: 0, kind: input, shape index: {}]   ;;  %s6137_s1 = inlined_call_operand.vmem [shape: bf16[2304,96], index: 1, kind: input, shape index: {}]   ;;  %s6138_s2 = inlined_call_operand.vmem [shape: f32[2304,1], index: 2, kind: input, shape index: {}]   ;;  %s6139_s3 = inlined_call_operand.vmem [shape: f32[2304,49], index: 3, kind: input, shape index: {}]   ;;  %s6140_s4 = inlined_call_operand.vmem [shape: f32[2304,49], index: 4, kind: output, shape index: {}]  }
   0x1 LB: > { %s3865_s16 = sadd.s32 4294967295, %s5087_s15   ;;  %p3869_p0 = scmp.ge.s32.totalorder %s5087_s15, 1  ;;  %s5087_s15 = sphi %s5115_s15, %s14_s15  }
   0x2   : > { %p185_p1 = scmp.lt.s32.totalorder %s5087_s15, 3 }
   0x4   : > { %p186_p2 = pnand %p3869_p0, %p185_p1 }
   0x5   : > { %s221_s19 = smul.u32 (!%p186_p2), 144, %s3865_s16 }
   0x6   : > { %189 = sbr.rel (%p186_p2) target bundleno = 676 (0x2a4), region = 36 }
   0x7   : > { %p222_p3 = scmp.lt.s32.totalorder (!%p186_p2), %s221_s19, 287 }
   0xb   : > { %v4427_v0 = vld [vmem:[%s6136_s0 + $0x28] sm:$0xff]   ;;  %v4428_v1 = vld [vmem:[%s6136_s0 + $0x20] sm:$0xff]   ;;  %v4429_v2 = vld [vmem:[%s6136_s0 + $0x18] sm:$0xff]   ;;  %s6142_s19 = smov (!%p222_p3, %s221_s19), 287  ;;  %vm942_vm0 = vcmask 785408   ;;  %vm3640_vm1 = vcmask 400384  }
   0xc   : > { %4248 = vmatprep.subr.bf16.mxu0 %v4427_v0  ;;  %4404 = vmatprep.subr.bf16.mxu1 %v4427_v0  ;;  %s3870_s24 = sshll.u32 %s6142_s19, 2  ;;  %v4430_v3 = vld [vmem:[%s6136_s0 + $0x10] sm:$0xff]   ;;  %v4431_v6 = vld [vmem:[%s6136_s0 + $0x8] sm:$0xff]   ;;  %v4432_v7 = vld [vmem:[%s6136_s0] sm:$0xff]   ;;  %s5294_s8 = sshll.u32 %s6142_s19, 3 }
   0xd   : > { %4249 = vmatpush3.bf16.msra.mxu0 %v4427_v0  ;;  %4410 = vmatpush3.bf16.msra.mxu1 %v4427_v0  ;;  %s5141_s29 = scalar_lea.vmem %s6137_s1, %s3870_s24  ;;  %v5089_v0 = vmov 0   ;;  %s5300_s11 = scalar_lea.vmem %s6138_s2, %s5294_s8 }
   0xe   : > { %4250 = vmatprep.subr.bf16.mxu0 %v4428_v1  ;;  %4405 = vmatprep.subr.bf16.mxu1 %v4428_v1  ;;  %v4433_v4 = vld [vmem:[%s5141_s29] sm:$0xff]   ;;  %v4435_v8 = vld [vmem:[%s5141_s29 + $0x8] sm:$0xff]   ;;  %v4437_v10 = vld [vmem:[%s5141_s29 + $0x10] sm:$0xff]   ;;  %s5500_s14 = scalar_lea.vmem %s6139_s3, %s5294_s8  ;;  %s5523_s18 = scalar_lea.vmem %s6140_s4, %s5294_s8 }
   0xf   : > { %v4434_v5 = vld [vmem:[%s5141_s29 + $0x120] sm:$0xff]   ;;  %4260 = vmatprep.mubr.msk.bf16.mxu0 %vm942_vm0, %v4433_v4  ;;  %v4436_v9 = vld [vmem:[%s5141_s29 + $0x128] sm:$0xff]   ;;  %v4439_v11 = vld [vmem:[%s5141_s29 + $0x130] sm:$0xff]   ;;  %4426 = vset.pattern.permute.xlu0 %v5089_v0 }
  0x10   : > { %4332 = vmatprep.mubr.msk.bf16.mxu1 %vm942_vm0, %v4434_v5  ;;  %v4438_v12 = vld [vmem:[%s5141_s29 + $0x18] sm:$0xff]   ;;  %v4441_v14 = vld [vmem:[%s5141_s29 + $0x20] sm:$0xff]   ;;  %v4442_v16 = vld [vmem:[%s5141_s29 + $0x28] sm:$0xff]   ;;  %4425 = vset.pattern.permute.xlu1 %v5089_v0 }
  0x11   : > { %4251 = vmatpush3.bf16.msra.mxu0 %v4428_v1  ;;  %4411 = vmatpush3.bf16.msra.mxu1 %v4428_v1  ;;  %v4440_v13 = vld [vmem:[%s5141_s29 + $0x138] sm:$0xff]   ;;  %v4443_v15 = vld [vmem:[%s5141_s29 + $0x140] sm:$0xff]   ;;  %v4444_v17 = vld [vmem:[%s5141_s29 + $0x148] sm:$0xff]  }
  0x12   : > { %4252 = vmatprep.subr.bf16.mxu0 %v4429_v2  ;;  %4406 = vmatprep.subr.bf16.mxu1 %v4429_v2  ;;  %v4445_v18 = vld [vmem:[%s5141_s29 + $0x30] sm:$0xff]   ;;  %v4446_v20 = vld [vmem:[%s5141_s29 + $0x38] sm:$0xff]   ;;  %v4449_v22 = vld [vmem:[%s5141_s29 + $0x40] sm:$0xff]  }
  0x13   : > { %v4447_v19 = vld [vmem:[%s5141_s29 + $0x150] sm:$0xff]   ;;  %v4448_v21 = vld [vmem:[%s5141_s29 + $0x158] sm:$0xff]   ;;  %v4451_v23 = vld [vmem:[%s5141_s29 + $0x160] sm:$0xff]  }
  0x14   : > { %v4450_v24 = vld [vmem:[%s5141_s29 + $0x48] sm:$0xff]   ;;  %v4453_v26 = vld [vmem:[%s5141_s29 + $0x50] sm:$0xff]   ;;  %v4454_v28 = vld [vmem:[%s5141_s29 + $0x58] sm:$0xff]  }
  0x15   : > { %4253 = vmatpush3.bf16.msra.mxu0 %v4429_v2  ;;  %4412 = vmatpush3.bf16.msra.mxu1 %v4429_v2  ;;  %v4452_v25 = vld [vmem:[%s5141_s29 + $0x168] sm:$0xff]   ;;  %v4455_v27 = vld [vmem:[%s5141_s29 + $0x170] sm:$0xff]   ;;  %v4456_v29 = vld [vmem:[%s5141_s29 + $0x178] sm:$0xff]  }
  0x16   : > { %4254 = vmatprep.subr.bf16.mxu0 %v4430_v3  ;;  %4407 = vmatprep.subr.bf16.mxu1 %v4430_v3  ;;  %v4457_v30 = vld [vmem:[%s5141_s29 + $0x60] sm:$0xff]   ;;  %v4458_v32 = vld [vmem:[%s5141_s29 + $0x68] sm:$0xff]   ;;  %v4461_v34 = vld [vmem:[%s5141_s29 + $0x70] sm:$0xff]  }
  0x17   : > { %v4459_v31 = vld [vmem:[%s5141_s29 + $0x180] sm:$0xff]   ;;  %v4460_v33 = vld [vmem:[%s5141_s29 + $0x188] sm:$0xff]   ;;  %v4463_v35 = vld [vmem:[%s5141_s29 + $0x190] sm:$0xff]  }
  0x18   : > { %v4462_v36 = vld [vmem:[%s5141_s29 + $0x78] sm:$0xff]   ;;  %v4465_v38 = vld [vmem:[%s5141_s29 + $0x80] sm:$0xff]   ;;  %v4466_v40 = vld [vmem:[%s5141_s29 + $0x88] sm:$0xff]  }
  0x19   : > { %4255 = vmatpush3.bf16.msra.mxu0 %v4430_v3  ;;  %4413 = vmatpush3.bf16.msra.mxu1 %v4430_v3  ;;  %v4464_v37 = vld [vmem:[%s5141_s29 + $0x198] sm:$0xff]   ;;  %v4467_v39 = vld [vmem:[%s5141_s29 + $0x1a0] sm:$0xff]   ;;  %v4468_v41 = vld [vmem:[%s5141_s29 + $0x1a8] sm:$0xff]  }
  0x1a   : > { %4256 = vmatprep.subr.bf16.mxu0 %v4431_v6  ;;  %4408 = vmatprep.subr.bf16.mxu1 %v4431_v6  ;;  %v4469_v42 = vld [vmem:[%s5141_s29 + $0x90] sm:$0xff]   ;;  %v4470_v44 = vld [vmem:[%s5141_s29 + $0x98] sm:$0xff]   ;;  %v4473_v46 = vld [vmem:[%s5141_s29 + $0xa0] sm:$0xff]  }
  0x1b   : > { %v4471_v43 = vld [vmem:[%s5141_s29 + $0x1b0] sm:$0xff]   ;;  %v4472_v45 = vld [vmem:[%s5141_s29 + $0x1b8] sm:$0xff]   ;;  %v4475_v47 = vld [vmem:[%s5141_s29 + $0x1c0] sm:$0xff]  }
  0x1c   : > { %v4474_v48 = vld [vmem:[%s5141_s29 + $0xa8] sm:$0xff]   ;;  %v4477_v50 = vld [vmem:[%s5141_s29 + $0xb0] sm:$0xff]   ;;  %v4478_v52 = vld [vmem:[%s5141_s29 + $0xb8] sm:$0xff]  }
  0x1d   : > { %4257 = vmatpush3.bf16.msra.mxu0 %v4431_v6  ;;  %4414 = vmatpush3.bf16.msra.mxu1 %v4431_v6  ;;  %v4476_v49 = vld [vmem:[%s5141_s29 + $0x1c8] sm:$0xff]   ;;  %v4479_v51 = vld [vmem:[%s5141_s29 + $0x1d0] sm:$0xff]   ;;  %v4480_v53 = vld [vmem:[%s5141_s29 + $0x1d8] sm:$0xff]  }
  0x1e   : > { %4258 = vmatprep.subr.bf16.mxu0 %v4432_v7  ;;  %4409 = vmatprep.subr.bf16.mxu1 %v4432_v7  ;;  %v4481_v54 = vld [vmem:[%s5141_s29 + $0xc0] sm:$0xff]   ;;  %v4482_v56 = vld [vmem:[%s5141_s29 + $0xc8] sm:$0xff]   ;;  %v4485_v58 = vld [vmem:[%s5141_s29 + $0xd0] sm:$0xff]  }
  0x1f   : > { %v4483_v55 = vld [vmem:[%s5141_s29 + $0x1e0] sm:$0xff]   ;;  %v4484_v57 = vld [vmem:[%s5141_s29 + $0x1e8] sm:$0xff]   ;;  %v4487_v59 = vld [vmem:[%s5141_s29 + $0x1f0] sm:$0xff]  }
  0x20   : > { %v4486_v60 = vld [vmem:[%s5141_s29 + $0xd8] sm:$0xff]   ;;  %v4489_v62 = vld [vmem:[%s5141_s29 + $0xe0] sm:$0xff]   ;;  %v4490_v1 = vld [vmem:[%s5141_s29 + $0xe8] sm:$0xff]  }
  0x21   : > { %4259 = vmatpush3.bf16.msra.mxu0 %v4432_v7  ;;  %4415 = vmatpush3.bf16.msra.mxu1 %v4432_v7  ;;  %v4488_v61 = vld [vmem:[%s5141_s29 + $0x1f8] sm:$0xff]   ;;  %v4491_v63 = vld [vmem:[%s5141_s29 + $0x200] sm:$0xff]   ;;  %v4492_v2 = vld [vmem:[%s5141_s29 + $0x208] sm:$0xff]  }
  0x22   : > { %v4493_v3 = vld [vmem:[%s5141_s29 + $0xf0] sm:$0xff]   ;;  %v4494_v5 = vld [vmem:[%s5141_s29 + $0xf8] sm:$0xff]   ;;  %v4497_v7 = vld [vmem:[%s5141_s29 + $0x100] sm:$0xff]  }
  0x23   : > { %v4495_v4 = vld [vmem:[%s5141_s29 + $0x210] sm:$0xff]   ;;  %v4496_v6 = vld [vmem:[%s5141_s29 + $0x218] sm:$0xff]   ;;  %v407_v0 = vld [vmem:[%s5300_s11 + $0x28] sm:$0xff] }
  0x24   : > { %4261 = vmatmul.mubr.msk.bf16.vlgmr.msra.gmra.mxu0 %vm942_vm0, %v4435_v8  ;;  %4333 = vmatmul.mubr.msk.bf16.vlgmr.msra.gmra.mxu1 %vm942_vm0, %v4436_v9  ;;  %v4498_v8 = vld [vmem:[%s5141_s29 + $0x108] sm:$0xff]   ;;  %v4499_v9 = vld [vmem:[%s5141_s29 + $0x220] sm:$0xff]  }
  0x25   : > { %4264 = vmatprep.mubr.msk.bf16.mxu0 %vm942_vm0, %v4437_v10  ;;  %4336 = vmatprep.mubr.msk.bf16.mxu1 %vm942_vm0, %v4439_v11  ;;  %v4500_v10 = vld [vmem:[%s5141_s29 + $0x228] sm:$0xff]   ;;  %v4501_v11 = vld [vmem:[%s5141_s29 + $0x110] sm:$0xff]  }
  0x2c   : > { %4265 = vmatmul.mubr.msk.bf16.gmra.mxu0 %vm942_vm0, %v4438_v12  ;;  %4337 = vmatmul.mubr.msk.bf16.gmra.mxu1 %vm942_vm0, %v4440_v13  ;;  %v4502_v12 = vld [vmem:[%s5141_s29 + $0x118] sm:$0xff]   ;;  %v4503_v13 = vld [vmem:[%s5141_s29 + $0x230] sm:$0xff]  }
  0x2d   : > { %4268 = vmatprep.mubr.msk.bf16.mxu0 %vm942_vm0, %v4441_v14  ;;  %4340 = vmatprep.mubr.msk.bf16.mxu1 %vm942_vm0, %v4443_v15  ;;  %v4504_v14 = vld [vmem:[%s5141_s29 + $0x238] sm:$0xff]   ;;  %v404_v15 = vld [vmem:[%s5300_s11 + $0x10] sm:$0xff] }
  0x34   : > { %4269 = vmatmul.mubr.msk.bf16.gmra.mxu0 %vm942_vm0, %v4442_v16  ;;  %4341 = vmatmul.mubr.msk.bf16.gmra.mxu1 %vm942_vm0, %v4444_v17  ;;  %v476_v16 = vld [vmem:[%s5300_s11 + $0x250] sm:$0xff] }
  0x35   : > { %4272 = vmatprep.mubr.msk.bf16.mxu0 %vm942_vm0, %v4445_v18  ;;  %4344 = vmatprep.mubr.msk.bf16.mxu1 %vm942_vm0, %v4447_v19  ;;  %v402_v19 = vld [vmem:[%s5300_s11] sm:$0xff] }
  0x3c   : > { %4273 = vmatmul.mubr.msk.bf16.gmra.mxu0 %vm942_vm0, %v4446_v20  ;;  %4345 = vmatmul.mubr.msk.bf16.gmra.mxu1 %vm942_vm0, %v4448_v21  ;;  %v474_v20 = vld [vmem:[%s5300_s11 + $0x240] sm:$0xff] }
  0x3d   : > { %4276 = vmatprep.mubr.msk.bf16.mxu0 %vm942_vm0, %v4449_v22  ;;  %4348 = vmatprep.mubr.msk.bf16.mxu1 %vm942_vm0, %v4451_v23 }
  0x44   : > { %4277 = vmatmul.mubr.msk.bf16.gmra.mxu0 %vm942_vm0, %v4450_v24  ;;  %4349 = vmatmul.mubr.msk.bf16.gmra.mxu1 %vm942_vm0, %v4452_v25  ;;  %v405_v25 = vld [vmem:[%s5300_s11 + $0x18] sm:$0xff] }
  0x45   : > { %4280 = vmatprep.mubr.msk.bf16.mxu0 %vm942_vm0, %v4453_v26  ;;  %4352 = vmatprep.mubr.msk.bf16.mxu1 %vm942_vm0, %v4455_v27 }
  0x4c   : > { %4281 = vmatmul.mubr.msk.bf16.gmra.mxu0 %vm942_vm0, %v4454_v28  ;;  %4353 = vmatmul.mubr.msk.bf16.gmra.mxu1 %vm942_vm0, %v4456_v29 }
  0x4d   : > { %4284 = vmatprep.mubr.msk.bf16.mxu0 %vm942_vm0, %v4457_v30  ;;  %4356 = vmatprep.mubr.msk.bf16.mxu1 %vm942_vm0, %v4459_v31  ;;  %v477_v30 = vld [vmem:[%s5300_s11 + $0x258] sm:$0xff] }
  0x54   : > { %4285 = vmatmul.mubr.msk.bf16.gmra.mxu0 %vm942_vm0, %v4458_v32  ;;  %4357 = vmatmul.mubr.msk.bf16.gmra.mxu1 %vm942_vm0, %v4460_v33  ;;  %v403_v33 = vld [vmem:[%s5300_s11 + $0x8] sm:$0xff] }
  0x55   : > { %4288 = vmatprep.mubr.msk.bf16.mxu0 %vm942_vm0, %v4461_v34  ;;  %4360 = vmatprep.mubr.msk.bf16.mxu1 %vm942_vm0, %v4463_v35  ;;  %v475_v34 = vld [vmem:[%s5300_s11 + $0x248] sm:$0xff] }
  0x5c   : > { %4289 = vmatmul.mubr.msk.bf16.gmra.mxu0 %vm942_vm0, %v4462_v36  ;;  %4361 = vmatmul.mubr.msk.bf16.gmra.mxu1 %vm942_vm0, %v4464_v37 }
  0x5d   : > { %4292 = vmatprep.mubr.msk.bf16.mxu0 %vm942_vm0, %v4465_v38  ;;  %4364 = vmatprep.mubr.msk.bf16.mxu1 %vm942_vm0, %v4467_v39 }
  0x64   : > { %4293 = vmatmul.mubr.msk.bf16.gmra.mxu0 %vm942_vm0, %v4466_v40  ;;  %4365 = vmatmul.mubr.msk.bf16.gmra.mxu1 %vm942_vm0, %v4468_v41  ;;  %v408_v41 = vld [vmem:[%s5300_s11 + $0x30] sm:$0xff] }
  0x65   : > { %4296 = vmatprep.mubr.msk.bf16.mxu0 %vm942_vm0, %v4469_v42  ;;  %4368 = vmatprep.mubr.msk.bf16.mxu1 %vm942_vm0, %v4471_v43 }
  0x6c   : > { %4297 = vmatmul.mubr.msk.bf16.gmra.mxu0 %vm942_vm0, %v4470_v44  ;;  %4369 = vmatmul.mubr.msk.bf16.gmra.mxu1 %vm942_vm0, %v4472_v45  ;;  %v480_v45 = vld [vmem:[%s5300_s11 + $0x270] sm:$0xff] }
  0x6d   : > { %4300 = vmatprep.mubr.msk.bf16.mxu0 %vm942_vm0, %v4473_v46  ;;  %4372 = vmatprep.mubr.msk.bf16.mxu1 %vm942_vm0, %v4475_v47 }
  0x74   : > { %4301 = vmatmul.mubr.msk.bf16.gmra.mxu0 %vm942_vm0, %v4474_v48  ;;  %4373 = vmatmul.mubr.msk.bf16.gmra.mxu1 %vm942_vm0, %v4476_v49  ;;  %v406_v48 = vld [vmem:[%s5300_s11 + $0x20] sm:$0xff] }
  0x75   : > { %4304 = vmatprep.mubr.msk.bf16.mxu0 %vm942_vm0, %v4477_v50  ;;  %4376 = vmatprep.mubr.msk.bf16.mxu1 %vm942_vm0, %v4479_v51  ;;  %v478_v50 = vld [vmem:[%s5300_s11 + $0x260] sm:$0xff] }
  0x7c   : > { %4305 = vmatmul.mubr.msk.bf16.gmra.mxu0 %vm942_vm0, %v4478_v52  ;;  %4377 = vmatmul.mubr.msk.bf16.gmra.mxu1 %vm942_vm0, %v4480_v53 }
  0x7d   : > { %4308 = vmatprep.mubr.msk.bf16.mxu0 %vm942_vm0, %v4481_v54  ;;  %4380 = vmatprep.mubr.msk.bf16.mxu1 %vm942_vm0, %v4483_v55 }
  0x84   : > { %4309 = vmatmul.mubr.msk.bf16.gmra.mxu0 %vm942_vm0, %v4482_v56  ;;  %4381 = vmatmul.mubr.msk.bf16.gmra.mxu1 %vm942_vm0, %v4484_v57  ;;  %v409_v56 = vld [vmem:[%s5300_s11 + $0x38] sm:$0xff] }
  0x85   : > { %4312 = vmatprep.mubr.msk.bf16.mxu0 %vm942_vm0, %v4485_v58  ;;  %4384 = vmatprep.mubr.msk.bf16.mxu1 %vm942_vm0, %v4487_v59 }
  0x8c   : > { %4313 = vmatmul.mubr.msk.bf16.gmra.mxu0 %vm942_vm0, %v4486_v60  ;;  %4385 = vmatmul.mubr.msk.bf16.gmra.mxu1 %vm942_vm0, %v4488_v61  ;;  %v481_v61 = vld [vmem:[%s5300_s11 + $0x278] sm:$0xff] }
  0x8d   : > { %4316 = vmatprep.mubr.msk.bf16.mxu0 %vm942_vm0, %v4489_v62  ;;  %4388 = vmatprep.mubr.msk.bf16.mxu1 %vm942_vm0, %v4491_v63 }
  0x94   : > { %4317 = vmatmul.mubr.msk.bf16.gmra.mxu0 %vm942_vm0, %v4490_v1  ;;  %4389 = vmatmul.mubr.msk.bf16.gmra.mxu1 %vm942_vm0, %v4492_v2  ;;  %v479_v2 = vld [vmem:[%s5300_s11 + $0x268] sm:$0xff] }
  0x95   : > { %4320 = vmatprep.mubr.msk.bf16.mxu0 %vm942_vm0, %v4493_v3  ;;  %4392 = vmatprep.mubr.msk.bf16.mxu1 %vm942_vm0, %v4495_v4 }
  0x9c   : > { %4321 = vmatmul.mubr.msk.bf16.gmra.mxu0 %vm942_vm0, %v4494_v5  ;;  %4393 = vmatmul.mubr.msk.bf16.gmra.mxu1 %vm942_vm0, %v4496_v6 }
  0x9d   : > { %4324 = vmatprep.mubr.msk.bf16.mxu0 %vm942_vm0, %v4497_v7  ;;  %4396 = vmatprep.mubr.msk.bf16.mxu1 %vm942_vm0, %v4499_v9 }
  0xa4   : > { %4325 = vmatmul.mubr.msk.bf16.gmra.mxu0 %vm942_vm0, %v4498_v8  ;;  %4397 = vmatmul.mubr.msk.bf16.gmra.mxu1 %vm942_vm0, %v4500_v10 }
  0xa5   : > { %4328 = vmatprep.mubr.msk.bf16.mxu0 %vm942_vm0, %v4501_v11  ;;  %4400 = vmatprep.mubr.msk.bf16.mxu1 %vm942_vm0, %v4503_v13 }
  0xac   : > { %4329 = vmatmul.mubr.msk.bf16.gmra.mxu0 %vm942_vm0, %v4502_v12  ;;  %4401 = vmatmul.mubr.msk.bf16.gmra.mxu1 %vm942_vm0, %v4504_v14 }
  0xe4   : > { %v4262_v17 = vpop.f32.mrf.mxu0  ;;  %v4334_v18 = vpop.f32.mrf.mxu1 }
  0xe5   : > { %v1202_v21 = vadd.f32 %v4262_v17, %v404_v15  ;;  %v1490_v22 = vadd.f32 %v4334_v18, %v476_v16 }
  0xe6   : > { %v1193_v23 = vpop.f32.mrf.mxu0  ;;  %v1481_v24 = vpop.f32.mrf.mxu1 }
  0xe7   : > { %v4026_v26 = vmul.f32 -1.442695, %v1202_v21  ;;  %v4098_v27 = vmul.f32 -1.442695, %v1490_v22  ;;  %v1194_v28 = vadd.f32 %v1193_v23, %v402_v19  ;;  %v1482_v29 = vadd.f32 %v1481_v24, %v474_v20 }
  0xe8   : > { %v4263_v31 = vpop.f32.mrf.mxu0  ;;  %v4335_v32 = vpop.f32.mrf.mxu1 }
  0xe9   : > { %4505 = vpow2.f32 %v4026_v26  ;;  %v4024_v35 = vmul.f32 -1.442695, %v1194_v28  ;;  %v4096_v36 = vmul.f32 -1.442695, %v1482_v29  ;;  %v1205_v37 = vadd.f32 %v4263_v31, %v405_v25 }
  0xea   : > { %4507 = vpow2.f32 %v4098_v27  ;;  %v1493_v38 = vadd.f32 %v4335_v32, %v477_v30  ;;  %v1196_v39 = vpop.f32.mrf.mxu0  ;;  %v1484_v40 = vpop.f32.mrf.mxu1 }
  0xeb   : > { %4509 = vpow2.f32 %v4024_v35  ;;  %v4027_v42 = vmul.f32 -1.442695, %v1205_v37  ;;  %v1197_v43 = vadd.f32 %v1196_v39, %v403_v33  ;;  %v1485_v44 = vadd.f32 %v1484_v40, %v475_v34  ;;  %v412_v39 = vld [vmem:[%s5300_s11 + $0x50] sm:$0xff] }
  0xec   : > { %4511 = vpow2.f32 %v4096_v36  ;;  %v4099_v46 = vmul.f32 -1.442695, %v1493_v38  ;;  %v4266_v47 = vpop.f32.mrf.mxu0  ;;  %v4338_v49 = vpop.f32.mrf.mxu1 }
  0xed   : > { %4513 = vpow2.f32 %v4027_v42  ;;  %v4025_v51 = vmul.f32 -1.442695, %v1197_v43  ;;  %v4097_v52 = vmul.f32 -1.442695, %v1485_v44  ;;  %v1218_v53 = vadd.f32 %v4266_v47, %v408_v41  ;;  %v410_v43 = vld [vmem:[%s5300_s11 + $0x40] sm:$0xff]  ;;  %v413_v47 = vld [vmem:[%s5300_s11 + $0x58] sm:$0xff] }
  0xee   : > { %4515 = vpow2.f32 %v4099_v46  ;;  %v1209_v54 = vpop.f32.mrf.mxu0  ;;  %v1506_v55 = vadd.f32 %v4338_v49, %v480_v45  ;;  %v1497_v57 = vpop.f32.mrf.mxu1 }
  0xef   : > { %4517 = vpow2.f32 %v4025_v51  ;;  %v4030_v58 = vmul.f32 -1.442695, %v1218_v53  ;;  %v1210_v59 = vadd.f32 %v1209_v54, %v406_v48  ;;  %v1498_v60 = vadd.f32 %v1497_v57, %v478_v50  ;;  %v484_v51 = vld [vmem:[%s5300_s11 + $0x290] sm:$0xff] }
  0xf0   : > { %4519 = vpow2.f32 %v4097_v52  ;;  %v4102_v62 = vmul.f32 -1.442695, %v1506_v55  ;;  %v4267_v63 = vpop.f32.mrf.mxu0  ;;  %v4339_v1 = vpop.f32.mrf.mxu1 }
  0xf1   : > { %4521 = vpow2.f32 %v4030_v58  ;;  %v4028_v3 = vmul.f32 -1.442695, %v1210_v59  ;;  %v1221_v4 = vadd.f32 %v4267_v63, %v409_v56  ;;  %v4100_v5 = vmul.f32 -1.442695, %v1498_v60  ;;  %v411_v56 = vld [vmem:[%s5300_s11 + $0x48] sm:$0xff] }
  0xf2   : > { %4523 = vpow2.f32 %v4102_v62  ;;  %v1212_v6 = vpop.f32.mrf.mxu0  ;;  %v1509_v7 = vadd.f32 %v4339_v1, %v481_v61  ;;  %v1500_v8 = vpop.f32.mrf.mxu1  ;;  %v482_v61 = vld [vmem:[%s5300_s11 + $0x280] sm:$0xff]  ;;  %v485_v1 = vld [vmem:[%s5300_s11 + $0x298] sm:$0xff] }
  0xf3   : > { %4525 = vpow2.f32 %v4028_v3  ;;  %v4031_v9 = vmul.f32 -1.442695, %v1221_v4  ;;  %v1213_v10 = vadd.f32 %v1212_v6, %v407_v0  ;;  %v1501_v11 = vadd.f32 %v1500_v8, %v479_v2  ;;  %v483_v6 = vld [vmem:[%s5300_s11 + $0x288] sm:$0xff] }
  0xf4   : > { %4527 = vpow2.f32 %v4100_v5  ;;  %v4103_v12 = vmul.f32 -1.442695, %v1509_v7  ;;  %v4270_v13 = vpop.f32.mrf.mxu0  ;;  %v5318_v14 = vpop.f32.mrf.mxu1 }
  0xf5   : > { %4529 = vpow2.f32 %v4031_v9  ;;  %v4029_v15 = vmul.f32 -1.442695, %v1213_v10  ;;  %v4101_v16 = vmul.f32 -1.442695, %v1501_v11  ;;  %v1234_v50 = vadd.f32 %v4270_v13, %v412_v39  ;;  %v489_v39 = vld [vmem:[%s5300_s11 + $0x2b8] sm:$0xff] }
  0xf6   : > { %v4506_v17 = vpop.eup %4505  ;;  %4531 = vpow2.f32 %v4103_v12  ;;  %v1225_v18 = vpop.f32.mrf.mxu0  ;;  %v1522_v0 = vadd.f32 %v5318_v14, %v484_v51  ;;  %v416_v12 = vld [vmem:[%s5300_s11 + $0x70] sm:$0xff] }
  0xf7   : > { %v4508_v19 = vpop.eup %4507  ;;  %v2202_v20 = vadd.f32 1.0, %v4506_v17  ;;  %4533 = vpow2.f32 %v4029_v15  ;;  %v5320_v21 = vpop.f32.mrf.mxu1  ;;  %v1226_v55 = vadd.f32 %v1225_v18, %v410_v43  ;;  %v4034_v4 = vmul.f32 -1.442695, %v1234_v50  ;;  %v414_v17 = vld [vmem:[%s5300_s11 + $0x60] sm:$0xff] }
  0xf8   : > { %v4510_v22 = vpop.eup %4509  ;;  %v2274_v23 = vadd.f32 1.0, %v4508_v19  ;;  %4535 = vpow2.f32 %v4101_v16  ;;  %v4271_v24 = vpop.f32.mrf.mxu0  ;;  %v1514_v11 = vadd.f32 %v5320_v21, %v482_v61  ;;  %v4106_v19 = vmul.f32 -1.442695, %v1522_v0 }
  0xf9   : > { %v4512_v25 = vpop.eup %4511  ;;  %4537 = vrcp.f32 %v2202_v20  ;;  %v2200_v26 = vadd.f32 1.0, %v4510_v22  ;;  %v4343_v31 = vpop.f32.mrf.mxu1  ;;  %v1237_v60 = vadd.f32 %v4271_v24, %v413_v47  ;;  %v4032_v10 = vmul.f32 -1.442695, %v1226_v55  ;;  %v417_v22 = vld [vmem:[%s5300_s11 + $0x78] sm:$0xff] }
  0xfa   : > { %v4514_v27 = vpop.eup %4513  ;;  %4539 = vrcp.f32 %v2274_v23  ;;  %v2272_v28 = vadd.f32 1.0, %v4512_v25  ;;  %v1228_v34 = vpop.f32.mrf.mxu0  ;;  %v1525_v16 = vadd.f32 %v4343_v31, %v485_v1  ;;  %v488_v25 = vld [vmem:[%s5300_s11 + $0x2b0] sm:$0xff]  ;;  %v415_v31 = vld [vmem:[%s5300_s11 + $0x68] sm:$0xff] }
  0xfb   : > { %v4516_v29 = vpop.eup %4515  ;;  %4541 = vrcp.f32 %v2200_v26  ;;  %v2203_v30 = vadd.f32 1.0, %v4514_v27  ;;  %v1516_v44 = vpop.f32.mrf.mxu1  ;;  %v1229_v5 = vadd.f32 %v1228_v34, %v411_v56  ;;  %v4035_v14 = vmul.f32 -1.442695, %v1237_v60 }
  0xfc   : > { %v4518_v32 = vpop.eup %4517  ;;  %4543 = vrcp.f32 %v2272_v28  ;;  %v2275_v33 = vadd.f32 1.0, %v4516_v29  ;;  %v4274_v40 = vpop.f32.mrf.mxu0  ;;  %v1517_v20 = vadd.f32 %v1516_v44, %v483_v6  ;;  %v4104_v28 = vmul.f32 -1.442695, %v1514_v11  ;;  %v487_v44 = vld [vmem:[%s5300_s11 + $0x2a8] sm:$0xff] }
  0xfd   : > { %v4520_v35 = vpop.eup %4519  ;;  %4545 = vrcp.f32 %v2203_v30  ;;  %v2201_v36 = vadd.f32 1.0, %v4518_v32  ;;  %v5326_v52 = vpop.f32.mrf.mxu1  ;;  %v4033_v21 = vmul.f32 -1.442695, %v1229_v5  ;;  %v1250_v24 = vadd.f32 %v4274_v40, %v416_v12 }
  0xfe   : > { %v4522_v37 = vpop.eup %4521  ;;  %4547 = vrcp.f32 %v2275_v33  ;;  %v2273_v38 = vadd.f32 1.0, %v4520_v35  ;;  %v1241_v57 = vpop.f32.mrf.mxu0  ;;  %v4107_v33 = vmul.f32 -1.442695, %v1525_v16  ;;  %v486_v35 = vld [vmem:[%s5300_s11 + $0x2a0] sm:$0xff] }
  0xff   : > { %v4524_v41 = vpop.eup %4523  ;;  %4549 = vrcp.f32 %v2201_v36  ;;  %v2206_v42 = vadd.f32 1.0, %v4522_v37  ;;  %v1529_v7 = vpop.f32.mrf.mxu1  ;;  %v1242_v29 = vadd.f32 %v1241_v57, %v414_v17  ;;  %v4105_v37 = vmul.f32 -1.442695, %v1517_v20 }
 0x100   : > { %v4526_v45 = vpop.eup %4525  ;;  %4551 = vrcp.f32 %v2273_v38  ;;  %v2278_v46 = vadd.f32 1.0, %v4524_v41  ;;  %v4275_v13 = vpop.f32.mrf.mxu0  ;;  %v1538_v38 = vadd.f32 %v5326_v52, %v488_v25  ;;  %v4038_v41 = vmul.f32 -1.442695, %v1250_v24 }
 0x101   : > { %v4528_v48 = vpop.eup %4527  ;;  %4553 = vrcp.f32 %v2206_v42  ;;  %v2204_v49 = vadd.f32 1.0, %v4526_v45  ;;  %v4347_v26 = vpop.f32.mrf.mxu1  ;;  %v1253_v34 = vadd.f32 %v4275_v13, %v417_v22  ;;  %v1530_v47 = vadd.f32 %v1529_v7, %v486_v35  ;;  %v492_v35 = vld [vmem:[%s5300_s11 + $0x2d0] sm:$0xff] }
 0x102   : > { %v4530_v53 = vpop.eup %4529  ;;  %4555 = vrcp.f32 %v2278_v46  ;;  %v2276_v54 = vadd.f32 1.0, %v4528_v48  ;;  %v1244_v30 = vpop.f32.mrf.mxu0  ;;  %v4036_v46 = vmul.f32 -1.442695, %v1242_v29  ;;  %v1541_v50 = vadd.f32 %v4347_v26, %v489_v39 }
 0x103   : > { %v4532_v58 = vpop.eup %4531  ;;  %4557 = vrcp.f32 %v2204_v49  ;;  %v2207_v59 = vadd.f32 1.0, %v4530_v53  ;;  %v1245_v42 = vadd.f32 %v1244_v30, %v415_v31  ;;  %v1532_v43 = vpop.f32.mrf.mxu1  ;;  %v4039_v49 = vmul.f32 -1.442695, %v1253_v34  ;;  %v421_v31 = vld [vmem:[%s5300_s11 + $0x98] sm:$0xff] }
 0x104   : > { %v4534_v62 = vpop.eup %4533  ;;  %4559 = vrcp.f32 %v2276_v54  ;;  %v2279_v63 = vadd.f32 1.0, %v4532_v58  ;;  %v4110_v52 = vmul.f32 -1.442695, %v1538_v38  ;;  %v1533_v53 = vadd.f32 %v1532_v43, %v487_v44  ;;  %v5345_v54 = vpop.f32.mrf.mxu0 }
 0x105   : > { %v4536_v2 = vpop.eup %4535  ;;  %4561 = vrcp.f32 %v2207_v59  ;;  %v2205_v3 = vadd.f32 1.0, %v4534_v62  ;;  %v4037_v56 = vmul.f32 -1.442695, %v1245_v42  ;;  %v4108_v58 = vmul.f32 -1.442695, %v1530_v47  ;;  %v5349_v61 = vpop.f32.mrf.mxu1 }
 0x106   : > { %v4538_v8 = vpop.eup %4537  ;;  %4563 = vrcp.f32 %v2279_v63  ;;  %v2277_v9 = vadd.f32 1.0, %v4536_v2  ;;  %v4111_v60 = vmul.f32 -1.442695, %v1541_v50  ;;  %v4109_v63 = vmul.f32 -1.442695, %v1533_v53  ;;  %v1257_v0 = vpop.f32.mrf.mxu0 }
 0x107   : > { %v4540_v15 = vpop.eup %4539  ;;  %4565 = vrcp.f32 %v2205_v3  ;;  %2788 = vperm.xlu1 %4425, %v4538_v8   ;;  %v5353_v5 = vpop.f32.mrf.mxu1 }
 0x108   : > { %v4542_v18 = vpop.eup %4541  ;;  %4567 = vrcp.f32 %v2277_v9  ;;  %3148 = vperm.xlu0 %4426, %v4540_v15   ;;  %v4279_v8 = vpop.f32.mrf.mxu0 }
 0x109   : > { %v4544_v23 = vpop.eup %4543  ;;  %4569 = vpow2.f32 %v4034_v4  ;;  %v1269_v44 = vadd.f32 %v4279_v8, %v421_v31 }
 0x10a   : > { %v4546_v27 = vpop.eup %4545  ;;  %4571 = vpow2.f32 %v4032_v10 }
 0x10b   : > { %v4548_v32 = vpop.eup %4547  ;;  %4573 = vpow2.f32 %v4035_v14  ;;  %2793 = vperm.xlu1 %4425, %v4546_v27   ;;  %v5355_v14 = vpop.f32.mrf.mxu1  ;;  %v418_v27 = vld [vmem:[%s5300_s11 + $0x80] sm:$0xff] }
 0x10c   : > { %v4550_v36 = vpop.eup %4549  ;;  %4575 = vpow2.f32 %v4106_v19  ;;  %2778 = vperm.xlu0 %4426, %v4542_v18   ;;  %v1260_v18 = vpop.f32.mrf.mxu0  ;;  %v1258_v39 = vadd.f32 %v1257_v0, %v418_v27 }
 0x10d   : > { %v4552_v40 = vpop.eup %4551  ;;  %4577 = vpow2.f32 %v4033_v21  ;;  %v420_v21 = vld [vmem:[%s5300_s11 + $0x90] sm:$0xff] }
 0x10e   : > { %v4554_v45 = vpop.eup %4553  ;;  %4579 = vpow2.f32 %v4104_v28  ;;  %v5358_v24 = vpop.f32.mrf.mxu0  ;;  %v1266_v34 = vadd.f32 %v5345_v54, %v420_v21  ;;  %v491_v54 = vld [vmem:[%s5300_s11 + $0x2c8] sm:$0xff]  ;;  %v497_v21 = vld [vmem:[%s5300_s11 + $0x2f8] sm:$0xff] }
 0x10f   : > { %v4556_v48 = vpop.eup %4555  ;;  %4581 = vpow2.f32 %v4107_v33  ;;  %3153 = vperm.xlu1 %4425, %v4548_v32   ;;  %v1548_v28 = vpop.f32.mrf.mxu1 }
 0x110   : > { %v5343_v51 = vpop.eup %4557  ;;  %4583 = vpow2.f32 %v4105_v37  ;;  %3138 = vperm.xlu0 %4426, %v4544_v23  }
 0x111   : > { %v5347_v55 = vpop.eup %4559  ;;  %4585 = vpow2.f32 %v4038_v41  ;;  %v1273_v41 = vpop.f32.mrf.mxu0 }
 0x112   : > { %v4562_v57 = vpop.eup %4561  ;;  %4587 = vpow2.f32 %v4036_v46 }
 0x113   : > { %v4564_v59 = vpop.eup %4563  ;;  %4589 = vpow2.f32 %v4039_v49  ;;  %3143 = vperm.xlu1 %4425, %v4552_v40   ;;  %v419_v40 = vld [vmem:[%s5300_s11 + $0x88] sm:$0xff]  ;;  %v493_v49 = vld [vmem:[%s5300_s11 + $0x2d8] sm:$0xff] }
 0x114   : > { %v4566_v62 = vpop.eup %4565  ;;  %4591 = vpow2.f32 %v4110_v52  ;;  %2783 = vperm.xlu0 %4426, %v4550_v36   ;;  %v5365_v36 = vpop.f32.mrf.mxu1  ;;  %v4042_v52 = vmul.f32 -1.442695, %v1266_v34  ;;  %v1261_v53 = vadd.f32 %v1260_v18, %v419_v40  ;;  %v1557_v0 = vadd.f32 %v5355_v14, %v493_v49  ;;  %v423_v14 = vld [vmem:[%s5300_s11 + $0xa8] sm:$0xff] }
 0x115   : > { %v5351_v1 = vpop.eup %4567  ;;  %4593 = vpow2.f32 %v4037_v56 }
 0x116   : > { %v4570_v2 = vpop.eup %4569  ;;  %4595 = vpow2.f32 %v4108_v58  ;;  %v1561_v56 = vpop.f32.mrf.mxu1 }
 0x117   : > { %v4572_v3 = vpop.eup %4571  ;;  %v2210_v4 = vadd.f32 1.0, %v4570_v2  ;;  %4597 = vpow2.f32 %v4111_v60  ;;  %2813 = vperm.xlu1 %4425, %v4562_v57  }
 0x118   : > { %v4574_v6 = vpop.eup %4573  ;;  %v2208_v7 = vadd.f32 1.0, %v4572_v3  ;;  %4599 = vpow2.f32 %v4109_v63  ;;  %2808 = vperm.xlu0 %4426, %v4554_v45   ;;  %v490_v45 = vld [vmem:[%s5300_s11 + $0x2c0] sm:$0xff] }
 0x119   : > { %v4576_v9 = vpop.eup %4575  ;;  %4601 = vrcp.f32 %v2210_v4  ;;  %v2211_v10 = vadd.f32 1.0, %v4574_v6  ;;  %v1546_v60 = vadd.f32 %v5353_v5, %v490_v45  ;;  %v1549_v4 = vadd.f32 %v1548_v28, %v491_v54  ;;  %v425_v6 = vld [vmem:[%s5300_s11 + $0xb8] sm:$0xff]  ;;  %v495_v28 = vld [vmem:[%s5300_s11 + $0x2e8] sm:$0xff] }
 0x11a   : > { %v4578_v11 = vpop.eup %4577  ;;  %4603 = vrcp.f32 %v2208_v7  ;;  %v2282_v12 = vadd.f32 1.0, %v4576_v9  ;;  %v4041_v5 = vmul.f32 -1.442695, %v1261_v53  ;;  %v496_v9 = vld [vmem:[%s5300_s11 + $0x2f0] sm:$0xff] }
 0x11b   : > { %v4580_v13 = vpop.eup %4579  ;;  %4605 = vrcp.f32 %v2211_v10  ;;  %v2209_v15 = vadd.f32 1.0, %v4578_v11  ;;  %3173 = vperm.xlu1 %4425, %v4564_v59   ;;  %v4040_v59 = vmul.f32 -1.442695, %v1258_v39  ;;  %v4355_v10 = vpop.f32.mrf.mxu1 }
 0x11c   : > { %v4582_v16 = vpop.eup %4581  ;;  %4607 = vrcp.f32 %v2282_v12  ;;  %v2280_v17 = vadd.f32 1.0, %v4580_v13  ;;  %3168 = vperm.xlu0 %4426, %v4556_v48   ;;  %v1554_v48 = vadd.f32 %v5349_v61, %v492_v35  ;;  %v4283_v61 = vpop.f32.mrf.mxu0  ;;  %v4112_v12 = vmul.f32 -1.442695, %v1546_v60 }
 0x11d   : > { %v4584_v19 = vpop.eup %4583  ;;  %4609 = vrcp.f32 %v2209_v15  ;;  %v2283_v20 = vadd.f32 1.0, %v4582_v16  ;;  %v1285_v18 = vadd.f32 %v4283_v61, %v425_v6  ;;  %v1564_v27 = vpop.f32.mrf.mxu1  ;;  %v1573_v34 = vadd.f32 %v4355_v10, %v497_v21 }
 0x11e   : > { %v4586_v22 = vpop.eup %4585  ;;  %4611 = vrcp.f32 %v2280_v17  ;;  %v2281_v23 = vadd.f32 1.0, %v4584_v19  ;;  %v4114_v3 = vmul.f32 -1.442695, %v1554_v48  ;;  %v1276_v15 = vpop.f32.mrf.mxu0  ;;  %v4115_v17 = vmul.f32 -1.442695, %v1557_v0  ;;  %v494_v19 = vld [vmem:[%s5300_s11 + $0x2e0] sm:$0xff] }
 0x11f   : > { %v4588_v25 = vpop.eup %4587  ;;  %4613 = vrcp.f32 %v2283_v20  ;;  %v2214_v26 = vadd.f32 1.0, %v4586_v22  ;;  %2803 = vperm.xlu1 %4425, %v4566_v62   ;;  %v424_v62 = vld [vmem:[%s5300_s11 + $0xb0] sm:$0xff]  ;;  %v4113_v22 = vmul.f32 -1.442695, %v1549_v4  ;;  %v1562_v31 = vadd.f32 %v1561_v56, %v494_v19  ;;  %v5394_v45 = vpop.f32.mrf.mxu1 }
 0x120   : > { %v4590_v29 = vpop.eup %4589  ;;  %4615 = vrcp.f32 %v2281_v23  ;;  %v2212_v30 = vadd.f32 1.0, %v4588_v25  ;;  %2798 = vperm.xlu0 %4426, %v5343_v51   ;;  %v1282_v8 = vadd.f32 %v5358_v24, %v424_v62  ;;  %v1570_v23 = vadd.f32 %v5365_v36, %v496_v9  ;;  %v500_v19 = vld [vmem:[%s5300_s11 + $0x310] sm:$0xff] }
 0x121   : > { %v4592_v32 = vpop.eup %4591  ;;  %4617 = vrcp.f32 %v2214_v26  ;;  %v2215_v33 = vadd.f32 1.0, %v4590_v29  ;;  %v1277_v26 = vadd.f32 %v1276_v15, %v423_v14  ;;  %v5398_v53 = vpop.f32.mrf.mxu1  ;;  %v429_v14 = vld [vmem:[%s5300_s11 + $0xd8] sm:$0xff] }
 0x122   : > { %v4594_v37 = vpop.eup %4593  ;;  %4619 = vrcp.f32 %v2212_v30  ;;  %v2286_v38 = vadd.f32 1.0, %v4592_v32  ;;  %v4046_v25 = vmul.f32 -1.442695, %v1282_v8  ;;  %v4118_v36 = vmul.f32 -1.442695, %v1570_v23 }
 0x123   : > { %v4596_v42 = vpop.eup %4595  ;;  %4621 = vrcp.f32 %v2215_v33  ;;  %v2213_v43 = vadd.f32 1.0, %v4594_v37  ;;  %3163 = vperm.xlu1 %4425, %v5351_v1   ;;  %v422_v1 = vld [vmem:[%s5300_s11 + $0xa0] sm:$0xff]  ;;  %v4047_v33 = vmul.f32 -1.442695, %v1285_v18  ;;  %v1565_v37 = vadd.f32 %v1564_v27, %v495_v28 }
 0x124   : > { %v4598_v46 = vpop.eup %4597  ;;  %4623 = vrcp.f32 %v2286_v38  ;;  %v2284_v47 = vadd.f32 1.0, %v4596_v42  ;;  %3158 = vperm.xlu0 %4426, %v5347_v55   ;;  %v4043_v55 = vmul.f32 -1.442695, %v1269_v44  ;;  %v1274_v13 = vadd.f32 %v1273_v41, %v422_v1  ;;  %v5388_v38 = vpop.f32.mrf.mxu0 }
 0x125   : > { %v4600_v50 = vpop.eup %4599  ;;  %4625 = vrcp.f32 %v2213_v43  ;;  %v2287_v51 = vadd.f32 1.0, %v4598_v46  ;;  %v4045_v40 = vmul.f32 -1.442695, %v1277_v26  ;;  %v4116_v42 = vmul.f32 -1.442695, %v1562_v31 }
 0x126   : > { %v4602_v57 = vpop.eup %4601  ;;  %4627 = vrcp.f32 %v2284_v47  ;;  %v2285_v58 = vadd.f32 1.0, %v4600_v50  ;;  %v4044_v30 = vmul.f32 -1.442695, %v1274_v13  ;;  %v4119_v44 = vmul.f32 -1.442695, %v1573_v34  ;;  %v1289_v48 = vpop.f32.mrf.mxu0 }
 0x127   : > { %v4604_v63 = vpop.eup %4603  ;;  %4629 = vrcp.f32 %v2287_v51  ;;  %v4117_v47 = vmul.f32 -1.442695, %v1565_v37 }
 0x128   : > { %v4606_v2 = vpop.eup %4605  ;;  %4631 = vrcp.f32 %v2285_v58  ;;  %2828 = vperm.xlu0 %4426, %v4602_v57   ;;  %v4287_v57 = vpop.f32.mrf.mxu0 }
 0x129   : > { %v4608_v7 = vpop.eup %4607  ;;  %4633 = vpow2.f32 %v4042_v52  ;;  %2833 = vperm.xlu1 %4425, %v4606_v2   ;;  %v1301_v28 = vadd.f32 %v4287_v57, %v429_v14 }
 0x12a   : > { %v4610_v11 = vpop.eup %4609  ;;  %4635 = vpow2.f32 %v4040_v59  ;;  %v1292_v2 = vpop.f32.mrf.mxu0 }
 0x12b   : > { %v4612_v16 = vpop.eup %4611  ;;  %4637 = vpow2.f32 %v4043_v55  ;;  %v5400_v55 = vpop.f32.mrf.mxu1 }
 0x12c   : > { %v4614_v20 = vpop.eup %4613  ;;  %4639 = vpow2.f32 %v4114_v3  ;;  %3188 = vperm.xlu0 %4426, %v4608_v7   ;;  %v5403_v8 = vpop.f32.mrf.mxu0 }
 0x12d   : > { %v4616_v24 = vpop.eup %4615  ;;  %4641 = vpow2.f32 %v4041_v5  ;;  %3193 = vperm.xlu1 %4425, %v4614_v20   ;;  %v428_v5 = vld [vmem:[%s5300_s11 + $0xd0] sm:$0xff] }
 0x12e   : > { %v4618_v29 = vpop.eup %4617  ;;  %4643 = vpow2.f32 %v4112_v12  ;;  %v1580_v12 = vpop.f32.mrf.mxu1  ;;  %v1298_v18 = vadd.f32 %v5388_v38, %v428_v5  ;;  %v499_v38 = vld [vmem:[%s5300_s11 + $0x308] sm:$0xff]  ;;  %v505_v5 = vld [vmem:[%s5300_s11 + $0x338] sm:$0xff] }
 0x12f   : > { %v5386_v32 = vpop.eup %4619  ;;  %4645 = vpow2.f32 %v4115_v17 }
 0x130   : > { %v4622_v35 = vpop.eup %4621  ;;  %4647 = vpow2.f32 %v4113_v22  ;;  %2818 = vperm.xlu0 %4426, %v4604_v63   ;;  %v5411_v20 = vpop.f32.mrf.mxu1 }
 0x131   : > { %v4624_v39 = vpop.eup %4623  ;;  %4649 = vpow2.f32 %v4046_v25  ;;  %2823 = vperm.xlu1 %4425, %v4610_v11   ;;  %v426_v11 = vld [vmem:[%s5300_s11 + $0xc0] sm:$0xff]  ;;  %v1305_v25 = vpop.f32.mrf.mxu0 }
 0x132   : > { %v5390_v41 = vpop.eup %4625  ;;  %4651 = vpow2.f32 %v4044_v30  ;;  %v1290_v21 = vadd.f32 %v1289_v48, %v426_v11 }
 0x133   : > { %v5392_v43 = vpop.eup %4627  ;;  %4653 = vpow2.f32 %v4047_v33  ;;  %v501_v33 = vld [vmem:[%s5300_s11 + $0x318] sm:$0xff] }
 0x134   : > { %v4630_v46 = vpop.eup %4629  ;;  %4655 = vpow2.f32 %v4118_v36  ;;  %3178 = vperm.xlu0 %4426, %v4612_v16   ;;  %v4050_v36 = vmul.f32 -1.442695, %v1298_v18  ;;  %v1589_v48 = vadd.f32 %v5400_v55, %v501_v33  ;;  %v431_v55 = vld [vmem:[%s5300_s11 + $0xe8] sm:$0xff] }
 0x135   : > { %v5396_v49 = vpop.eup %4631  ;;  %4657 = vpow2.f32 %v4045_v40  ;;  %3183 = vperm.xlu1 %4425, %v4616_v24   ;;  %v427_v24 = vld [vmem:[%s5300_s11 + $0xc8] sm:$0xff] }
 0x136   : > { %v4634_v50 = vpop.eup %4633  ;;  %4659 = vpow2.f32 %v4116_v42  ;;  %v1293_v37 = vadd.f32 %v1292_v2, %v427_v24  ;;  %v4048_v42 = vmul.f32 -1.442695, %v1290_v21 }
 0x137   : > { %v4636_v51 = vpop.eup %4635  ;;  %v2218_v52 = vadd.f32 1.0, %v4634_v50  ;;  %4661 = vpow2.f32 %v4119_v44  ;;  %v430_v50 = vld [vmem:[%s5300_s11 + $0xe0] sm:$0xff] }
 0x138   : > { %v4638_v54 = vpop.eup %4637  ;;  %v2216_v56 = vadd.f32 1.0, %v4636_v51  ;;  %4663 = vpow2.f32 %v4117_v47  ;;  %2848 = vperm.xlu0 %4426, %v4618_v29   ;;  %v498_v29 = vld [vmem:[%s5300_s11 + $0x300] sm:$0xff]  ;;  %v4051_v47 = vmul.f32 -1.442695, %v1301_v28 }
 0x139   : > { %v4640_v58 = vpop.eup %4639  ;;  %4665 = vrcp.f32 %v2218_v52  ;;  %v2219_v59 = vadd.f32 1.0, %v4638_v54  ;;  %2853 = vperm.xlu1 %4425, %v4622_v35   ;;  %v1578_v44 = vadd.f32 %v5398_v53, %v498_v29  ;;  %v1581_v52 = vadd.f32 %v1580_v12, %v499_v38  ;;  %v433_v54 = vld [vmem:[%s5300_s11 + $0xf8] sm:$0xff]  ;;  %v503_v12 = vld [vmem:[%s5300_s11 + $0x328] sm:$0xff] }
 0x13a   : > { %v4642_v60 = vpop.eup %4641  ;;  %4667 = vrcp.f32 %v2216_v56  ;;  %v2290_v62 = vadd.f32 1.0, %v4640_v58  ;;  %v4049_v53 = vmul.f32 -1.442695, %v1293_v37  ;;  %v504_v58 = vld [vmem:[%s5300_s11 + $0x330] sm:$0xff] }
 0x13b   : > { %v4644_v61 = vpop.eup %4643  ;;  %4669 = vrcp.f32 %v2219_v59  ;;  %v2217_v63 = vadd.f32 1.0, %v4642_v60 }
 0x13c   : > { %v4646_v0 = vpop.eup %4645  ;;  %4671 = vrcp.f32 %v2290_v62  ;;  %v2288_v1 = vadd.f32 1.0, %v4644_v61  ;;  %3208 = vperm.xlu0 %4426, %v4624_v39   ;;  %v1593_v39 = vpop.f32.mrf.mxu1  ;;  %v4120_v62 = vmul.f32 -1.442695, %v1578_v44  ;;  %v1306_v61 = vadd.f32 %v1305_v25, %v430_v50 }
 0x13d   : > { %v4648_v3 = vpop.eup %4647  ;;  %4673 = vrcp.f32 %v2217_v63  ;;  %v2291_v4 = vadd.f32 1.0, %v4646_v0  ;;  %3213 = vperm.xlu1 %4425, %v4630_v46   ;;  %v4291_v46 = vpop.f32.mrf.mxu0 }
 0x13e   : > { %v4650_v6 = vpop.eup %4649  ;;  %4675 = vrcp.f32 %v2288_v1  ;;  %v2289_v7 = vadd.f32 1.0, %v4648_v3  ;;  %v4363_v59 = vpop.f32.mrf.mxu1  ;;  %v4123_v1 = vmul.f32 -1.442695, %v1589_v48  ;;  %v1317_v2 = vadd.f32 %v4291_v46, %v433_v54  ;;  %v502_v3 = vld [vmem:[%s5300_s11 + $0x320] sm:$0xff] }
 0x13f   : > { %v4652_v9 = vpop.eup %4651  ;;  %4677 = vrcp.f32 %v2291_v4  ;;  %v2222_v10 = vadd.f32 1.0, %v4650_v6  ;;  %v1308_v63 = vpop.f32.mrf.mxu0  ;;  %v4121_v6 = vmul.f32 -1.442695, %v1581_v52  ;;  %v1594_v14 = vadd.f32 %v1593_v39, %v502_v3  ;;  %v508_v3 = vld [vmem:[%s5300_s11 + $0x350] sm:$0xff] }
 0x140   : > { %v4654_v13 = vpop.eup %4653  ;;  %4679 = vrcp.f32 %v2289_v7  ;;  %v2220_v15 = vadd.f32 1.0, %v4652_v9  ;;  %2838 = vperm.xlu0 %4426, %v5386_v32   ;;  %v1586_v32 = vadd.f32 %v5394_v45, %v500_v19  ;;  %v432_v45 = vld [vmem:[%s5300_s11 + $0xf0] sm:$0xff]  ;;  %v1602_v7 = vadd.f32 %v5411_v20, %v504_v58  ;;  %v1596_v11 = vpop.f32.mrf.mxu1 }
 0x141   : > { %v4656_v16 = vpop.eup %4655  ;;  %4681 = vrcp.f32 %v2222_v10  ;;  %v2223_v17 = vadd.f32 1.0, %v4654_v13  ;;  %2843 = vperm.xlu1 %4425, %v5390_v41   ;;  %v1314_v57 = vadd.f32 %v5403_v8, %v432_v45  ;;  %v1309_v10 = vadd.f32 %v1308_v63, %v431_v55  ;;  %v437_v55 = vld [vmem:[%s5300_s11 + $0x118] sm:$0xff] }
 0x142   : > { %v4658_v22 = vpop.eup %4657  ;;  %4683 = vrcp.f32 %v2220_v15  ;;  %v2294_v23 = vadd.f32 1.0, %v4656_v16  ;;  %v4052_v15 = vmul.f32 -1.442695, %v1306_v61  ;;  %v1605_v18 = vadd.f32 %v4363_v59, %v505_v5  ;;  %v5440_v29 = vpop.f32.mrf.mxu1 }
 0x143   : > { %v4660_v26 = vpop.eup %4659  ;;  %4685 = vrcp.f32 %v2223_v17  ;;  %v2221_v27 = vadd.f32 1.0, %v4658_v22  ;;  %v4054_v9 = vmul.f32 -1.442695, %v1314_v57  ;;  %v4055_v17 = vmul.f32 -1.442695, %v1317_v2 }
 0x144   : > { %v4662_v30 = vpop.eup %4661  ;;  %4687 = vrcp.f32 %v2294_v23  ;;  %v2292_v31 = vadd.f32 1.0, %v4660_v26  ;;  %3198 = vperm.xlu0 %4426, %v5392_v43   ;;  %v4126_v20 = vmul.f32 -1.442695, %v1602_v7  ;;  %v1597_v22 = vadd.f32 %v1596_v11, %v503_v12  ;;  %v5434_v23 = vpop.f32.mrf.mxu0 }
 0x145   : > { %v4664_v34 = vpop.eup %4663  ;;  %4689 = vrcp.f32 %v2221_v27  ;;  %v2295_v35 = vadd.f32 1.0, %v4662_v30  ;;  %3203 = vperm.xlu1 %4425, %v5396_v49   ;;  %v4122_v49 = vmul.f32 -1.442695, %v1586_v32  ;;  %v4053_v24 = vmul.f32 -1.442695, %v1309_v10  ;;  %v5444_v37 = vpop.f32.mrf.mxu1 }
 0x146   : > { %v4666_v40 = vpop.eup %4665  ;;  %4691 = vrcp.f32 %v2292_v31  ;;  %v2293_v41 = vadd.f32 1.0, %v4664_v34  ;;  %v4124_v26 = vmul.f32 -1.442695, %v1594_v14  ;;  %v4127_v28 = vmul.f32 -1.442695, %v1605_v18  ;;  %v1321_v32 = vpop.f32.mrf.mxu0 }
 0x147   : > { %v4668_v43 = vpop.eup %4667  ;;  %4693 = vrcp.f32 %v2295_v35  ;;  %v4125_v31 = vmul.f32 -1.442695, %v1597_v22 }
 0x148   : > { %v4670_v51 = vpop.eup %4669  ;;  %4695 = vrcp.f32 %v2293_v41  ;;  %2868 = vperm.xlu0 %4426, %v4666_v40   ;;  %v4295_v40 = vpop.f32.mrf.mxu0 }
 0x149   : > { %v4672_v56 = vpop.eup %4671  ;;  %4697 = vpow2.f32 %v4050_v36  ;;  %2873 = vperm.xlu1 %4425, %v4670_v51   ;;  %v1333_v12 = vadd.f32 %v4295_v40, %v437_v55 }
 0x14a   : > { %v4674_v60 = vpop.eup %4673  ;;  %4699 = vpow2.f32 %v4048_v42  ;;  %v1324_v51 = vpop.f32.mrf.mxu0 }
 0x14b   : > { %v4676_v0 = vpop.eup %4675  ;;  %4701 = vpow2.f32 %v4051_v47  ;;  %v5446_v47 = vpop.f32.mrf.mxu1 }
 0x14c   : > { %v4678_v4 = vpop.eup %4677  ;;  %4703 = vpow2.f32 %v4122_v49  ;;  %3228 = vperm.xlu0 %4426, %v4672_v56   ;;  %v5449_v57 = vpop.f32.mrf.mxu0 }
 0x14d   : > { %v4680_v8 = vpop.eup %4679  ;;  %4705 = vpow2.f32 %v4049_v53  ;;  %3233 = vperm.xlu1 %4425, %v4678_v4   ;;  %v436_v53 = vld [vmem:[%s5300_s11 + $0x110] sm:$0xff] }
 0x14e   : > { %v4682_v13 = vpop.eup %4681  ;;  %4707 = vpow2.f32 %v4120_v62  ;;  %v1612_v62 = vpop.f32.mrf.mxu1  ;;  %v1330_v2 = vadd.f32 %v5434_v23, %v436_v53  ;;  %v507_v23 = vld [vmem:[%s5300_s11 + $0x348] sm:$0xff]  ;;  %v513_v53 = vld [vmem:[%s5300_s11 + $0x378] sm:$0xff] }
 0x14f   : > { %v5432_v16 = vpop.eup %4683  ;;  %4709 = vpow2.f32 %v4123_v1 }
 0x150   : > { %v4686_v19 = vpop.eup %4685  ;;  %4711 = vpow2.f32 %v4121_v6  ;;  %2858 = vperm.xlu0 %4426, %v4668_v43   ;;  %v5457_v4 = vpop.f32.mrf.mxu1 }
 0x151   : > { %v4688_v21 = vpop.eup %4687  ;;  %4713 = vpow2.f32 %v4054_v9  ;;  %2863 = vperm.xlu1 %4425, %v4674_v60   ;;  %v434_v60 = vld [vmem:[%s5300_s11 + $0x100] sm:$0xff]  ;;  %v1337_v9 = vpop.f32.mrf.mxu0 }
 0x152   : > { %v5436_v25 = vpop.eup %4689  ;;  %4715 = vpow2.f32 %v4052_v15  ;;  %v1322_v5 = vadd.f32 %v1321_v32, %v434_v60 }
 0x153   : > { %v5438_v27 = vpop.eup %4691  ;;  %4717 = vpow2.f32 %v4055_v17  ;;  %v509_v17 = vld [vmem:[%s5300_s11 + $0x358] sm:$0xff] }
 0x154   : > { %v4694_v30 = vpop.eup %4693  ;;  %4719 = vpow2.f32 %v4126_v20  ;;  %3218 = vperm.xlu0 %4426, %v4676_v0   ;;  %v4058_v20 = vmul.f32 -1.442695, %v1330_v2  ;;  %v1621_v32 = vadd.f32 %v5446_v47, %v509_v17  ;;  %v439_v47 = vld [vmem:[%s5300_s11 + $0x128] sm:$0xff] }
 0x155   : > { %v5442_v33 = vpop.eup %4695  ;;  %4721 = vpow2.f32 %v4053_v24  ;;  %3223 = vperm.xlu1 %4425, %v4680_v8   ;;  %v435_v8 = vld [vmem:[%s5300_s11 + $0x108] sm:$0xff] }
 0x156   : > { %v4698_v34 = vpop.eup %4697  ;;  %4723 = vpow2.f32 %v4124_v26  ;;  %v1325_v22 = vadd.f32 %v1324_v51, %v435_v8  ;;  %v4056_v26 = vmul.f32 -1.442695, %v1322_v5 }
 0x157   : > { %v4700_v35 = vpop.eup %4699  ;;  %v2226_v36 = vadd.f32 1.0, %v4698_v34  ;;  %4725 = vpow2.f32 %v4127_v28  ;;  %v438_v34 = vld [vmem:[%s5300_s11 + $0x120] sm:$0xff] }
 0x158   : > { %v4702_v38 = vpop.eup %4701  ;;  %v2224_v39 = vadd.f32 1.0, %v4700_v35  ;;  %4727 = vpow2.f32 %v4125_v31  ;;  %2888 = vperm.xlu0 %4426, %v4682_v13   ;;  %v506_v13 = vld [vmem:[%s5300_s11 + $0x340] sm:$0xff]  ;;  %v4059_v31 = vmul.f32 -1.442695, %v1333_v12 }
 0x159   : > { %v4704_v41 = vpop.eup %4703  ;;  %4729 = vrcp.f32 %v2226_v36  ;;  %v2227_v42 = vadd.f32 1.0, %v4702_v38  ;;  %2893 = vperm.xlu1 %4425, %v4686_v19   ;;  %v1610_v28 = vadd.f32 %v5444_v37, %v506_v13  ;;  %v1613_v36 = vadd.f32 %v1612_v62, %v507_v23  ;;  %v441_v38 = vld [vmem:[%s5300_s11 + $0x138] sm:$0xff]  ;;  %v511_v62 = vld [vmem:[%s5300_s11 + $0x368] sm:$0xff] }
 0x15a   : > { %v4706_v44 = vpop.eup %4705  ;;  %4731 = vrcp.f32 %v2224_v39  ;;  %v2298_v45 = vadd.f32 1.0, %v4704_v41  ;;  %v4057_v37 = vmul.f32 -1.442695, %v1325_v22  ;;  %v512_v41 = vld [vmem:[%s5300_s11 + $0x370] sm:$0xff] }
 0x15b   : > { %v4708_v46 = vpop.eup %4707  ;;  %4733 = vrcp.f32 %v2227_v42  ;;  %v2225_v43 = vadd.f32 1.0, %v4706_v44 }
 0x15c   : > { %v4710_v48 = vpop.eup %4709  ;;  %4735 = vrcp.f32 %v2298_v45  ;;  %v2296_v50 = vadd.f32 1.0, %v4708_v46  ;;  %3248 = vperm.xlu0 %4426, %v4688_v21   ;;  %v1625_v21 = vpop.f32.mrf.mxu1  ;;  %v4128_v45 = vmul.f32 -1.442695, %v1610_v28  ;;  %v1338_v46 = vadd.f32 %v1337_v9, %v438_v34 }
 0x15d   : > { %v4712_v49 = vpop.eup %4711  ;;  %4737 = vrcp.f32 %v2225_v43  ;;  %v2299_v52 = vadd.f32 1.0, %v4710_v48  ;;  %3253 = vperm.xlu1 %4425, %v4694_v30   ;;  %v4299_v30 = vpop.f32.mrf.mxu0 }
 0x15e   : > { %v4714_v54 = vpop.eup %4713  ;;  %4739 = vrcp.f32 %v2296_v50  ;;  %v2297_v56 = vadd.f32 1.0, %v4712_v49  ;;  %v4371_v42 = vpop.f32.mrf.mxu1  ;;  %v4131_v50 = vmul.f32 -1.442695, %v1621_v32  ;;  %v1349_v51 = vadd.f32 %v4299_v30, %v441_v38  ;;  %v510_v49 = vld [vmem:[%s5300_s11 + $0x360] sm:$0xff] }
 0x15f   : > { %v4716_v58 = vpop.eup %4715  ;;  %4741 = vrcp.f32 %v2299_v52  ;;  %v2230_v59 = vadd.f32 1.0, %v4714_v54  ;;  %v1340_v43 = vpop.f32.mrf.mxu0  ;;  %v4129_v54 = vmul.f32 -1.442695, %v1613_v36  ;;  %v1626_v55 = vadd.f32 %v1625_v21, %v510_v49 }
 0x160   : > { %v4718_v61 = vpop.eup %4717  ;;  %4743 = vrcp.f32 %v2297_v56  ;;  %v2228_v63 = vadd.f32 1.0, %v4716_v58  ;;  %2878 = vperm.xlu0 %4426, %v5432_v16   ;;  %v1618_v16 = vadd.f32 %v5440_v29, %v508_v3  ;;  %v440_v29 = vld [vmem:[%s5300_s11 + $0x130] sm:$0xff]  ;;  %v1634_v56 = vadd.f32 %v5457_v4, %v512_v41  ;;  %v1628_v60 = vpop.f32.mrf.mxu1 }
 0x161   : > { %v4720_v0 = vpop.eup %4719  ;;  %4745 = vrcp.f32 %v2230_v59  ;;  %v2231_v1 = vadd.f32 1.0, %v4718_v61  ;;  %2883 = vperm.xlu1 %4425, %v5436_v25   ;;  %v1346_v40 = vadd.f32 %v5449_v57, %v440_v29  ;;  %v1341_v59 = vadd.f32 %v1340_v43, %v439_v47  ;;  %v445_v47 = vld [vmem:[%s5300_s11 + $0x158] sm:$0xff] }
 0x162   : > { %v4722_v6 = vpop.eup %4721  ;;  %4747 = vrcp.f32 %v2228_v63  ;;  %v2302_v7 = vadd.f32 1.0, %v4720_v0  ;;  %v4060_v63 = vmul.f32 -1.442695, %v1338_v46  ;;  %v1637_v2 = vadd.f32 %v4371_v42, %v513_v53  ;;  %v5486_v13 = vpop.f32.mrf.mxu1 }
 0x163   : > { %v4724_v10 = vpop.eup %4723  ;;  %4749 = vrcp.f32 %v2231_v1  ;;  %v2229_v11 = vadd.f32 1.0, %v4722_v6  ;;  %v4062_v58 = vmul.f32 -1.442695, %v1346_v40  ;;  %v4063_v1 = vmul.f32 -1.442695, %v1349_v51 }
 0x164   : > { %v4726_v15 = vpop.eup %4725  ;;  %4751 = vrcp.f32 %v2302_v7  ;;  %v2300_v14 = vadd.f32 1.0, %v4724_v10  ;;  %3238 = vperm.xlu0 %4426, %v5438_v27   ;;  %v4134_v4 = vmul.f32 -1.442695, %v1634_v56  ;;  %v1629_v6 = vadd.f32 %v1628_v60, %v511_v62  ;;  %v5480_v7 = vpop.f32.mrf.mxu0 }
 0x165   : > { %v4728_v18 = vpop.eup %4727  ;;  %4753 = vrcp.f32 %v2229_v11  ;;  %v2303_v19 = vadd.f32 1.0, %v4726_v15  ;;  %3243 = vperm.xlu1 %4425, %v5442_v33   ;;  %v4130_v33 = vmul.f32 -1.442695, %v1618_v16  ;;  %v4061_v8 = vmul.f32 -1.442695, %v1341_v59  ;;  %v5492_v22 = vpop.f32.mrf.mxu1  ;;  %v443_v59 = vld [vmem:[%s5300_s11 + $0x148] sm:$0xff] }
 0x166   : > { %v4730_v24 = vpop.eup %4729  ;;  %4755 = vrcp.f32 %v2300_v14  ;;  %v2301_v25 = vadd.f32 1.0, %v4728_v18  ;;  %v4132_v10 = vmul.f32 -1.442695, %v1626_v55  ;;  %v4135_v12 = vmul.f32 -1.442695, %v1637_v2  ;;  %v5488_v16 = vpop.f32.mrf.mxu0 }
 0x167   : > { %v4732_v27 = vpop.eup %4731  ;;  %4757 = vrcp.f32 %v2303_v19  ;;  %v4133_v14 = vmul.f32 -1.442695, %v1629_v6 }
 0x168   : > { %v4734_v35 = vpop.eup %4733  ;;  %4759 = vrcp.f32 %v2301_v25  ;;  %2908 = vperm.xlu0 %4426, %v4730_v24   ;;  %v4303_v24 = vpop.f32.mrf.mxu0 }
 0x169   : > { %v4736_v39 = vpop.eup %4735  ;;  %4761 = vpow2.f32 %v4058_v20  ;;  %2913 = vperm.xlu1 %4425, %v4734_v35   ;;  %v1365_v55 = vadd.f32 %v4303_v24, %v445_v47  ;;  %v447_v47 = vld [vmem:[%s5300_s11 + $0x168] sm:$0xff] }
 0x16a   : > { %v4738_v44 = vpop.eup %4737  ;;  %4763 = vpow2.f32 %v4056_v26  ;;  %v1356_v35 = vpop.f32.mrf.mxu0 }
 0x16b   : > { %v4740_v48 = vpop.eup %4739  ;;  %4765 = vpow2.f32 %v4059_v31  ;;  %v5494_v31 = vpop.f32.mrf.mxu1 }
 0x16c   : > { %v4742_v52 = vpop.eup %4741  ;;  %4767 = vpow2.f32 %v4130_v33  ;;  %3268 = vperm.xlu0 %4426, %v4736_v39   ;;  %v5503_v40 = vpop.f32.mrf.mxu0 }
 0x16d   : > { %v4744_v57 = vpop.eup %4743  ;;  %4769 = vpow2.f32 %v4057_v37  ;;  %3273 = vperm.xlu1 %4425, %v4742_v52   ;;  %v444_v37 = vld [vmem:[%s5300_s11 + $0x150] sm:$0xff] }
 0x16e   : > { %v4746_v61 = vpop.eup %4745  ;;  %4771 = vpow2.f32 %v4128_v45  ;;  %v5506_v45 = vpop.f32.mrf.mxu1  ;;  %v1362_v49 = vadd.f32 %v5480_v7, %v444_v37  ;;  %v516_v52 = vld [vmem:[%s5300_s11 + $0x390] sm:$0xff]  ;;  %v449_v37 = vld [vmem:[%s5300_s11 + $0x178] sm:$0xff] }
 0x16f   : > { %v5478_v0 = vpop.eup %4747  ;;  %4773 = vpow2.f32 %v4131_v50  ;;  %v5525_v62 = vpop.f32.mrf.mxu0  ;;  %v1650_v6 = vadd.f32 %v5486_v13, %v516_v52  ;;  %v518_v52 = vld [vmem:[%s5300_s11 + $0x3a0] sm:$0xff] }
 0x170   : > { %v4750_v3 = vpop.eup %4749  ;;  %4775 = vpow2.f32 %v4129_v54  ;;  %2898 = vperm.xlu0 %4426, %v4732_v27   ;;  %v2706_v54 = vld [vmem:[%s5500_s14 + $0x250] sm:$0xff]  ;;  %v5515_v56 = vpop.f32.mrf.mxu1 }
 0x171   : > { %v4752_v5 = vpop.eup %4751  ;;  %4777 = vpow2.f32 %v4062_v58  ;;  %2903 = vperm.xlu1 %4425, %v4738_v44   ;;  %v442_v44 = vld [vmem:[%s5300_s11 + $0x140] sm:$0xff]  ;;  %v4307_v24 = vpop.f32.mrf.mxu0 }
 0x172   : > { %v5482_v9 = vpop.eup %4753  ;;  %4779 = vpow2.f32 %v4060_v63  ;;  %v1354_v58 = vadd.f32 %v5488_v16, %v442_v44  ;;  %v2632_v16 = vld [vmem:[%s5500_s14] sm:$0xff] }
 0x173   : > { %v5484_v11 = vpop.eup %4755  ;;  %4781 = vpow2.f32 %v4063_v1 }
 0x174   : > { %v4758_v15 = vpop.eup %4757  ;;  %4783 = vpow2.f32 %v4134_v4  ;;  %3258 = vperm.xlu0 %4426, %v4740_v48   ;;  %v2634_v48 = vld [vmem:[%s5500_s14 + $0x10] sm:$0xff] }
 0x175   : > { %v5490_v17 = vpop.eup %4759  ;;  %4785 = vpow2.f32 %v4061_v8  ;;  %3263 = vperm.xlu1 %4425, %v4744_v57   ;;  %v2635_v8 = vld [vmem:[%s5500_s14 + $0x18] sm:$0xff] }
 0x176   : > { %v4762_v18 = vpop.eup %4761  ;;  %4787 = vpow2.f32 %v4132_v10 }
 0x177   : > { %v4764_v19 = vpop.eup %4763  ;;  %v2234_v20 = vadd.f32 1.0, %v4762_v18  ;;  %4789 = vpow2.f32 %v4135_v12  ;;  %v4066_v12 = vmul.f32 -1.442695, %v1362_v49  ;;  %v5537_v18 = vpop.f32.mrf.mxu1 }
 0x178   : > { %v4766_v23 = vpop.eup %4765  ;;  %v2232_v21 = vadd.f32 1.0, %v4764_v19  ;;  %4791 = vpow2.f32 %v4133_v14  ;;  %2928 = vperm.xlu0 %4426, %v4746_v61   ;;  %v515_v14 = vld [vmem:[%s5300_s11 + $0x388] sm:$0xff]  ;;  %v4064_v19 = vmul.f32 -1.442695, %v1354_v58 }
 0x179   : > { %v4768_v25 = vpop.eup %4767  ;;  %4793 = vrcp.f32 %v2234_v20  ;;  %v2235_v26 = vadd.f32 1.0, %v4766_v23  ;;  %2933 = vperm.xlu1 %4425, %v4750_v3   ;;  %v2705_v58 = vld [vmem:[%s5500_s14 + $0x248] sm:$0xff] }
 0x17a   : > { %v4770_v28 = vpop.eup %4769  ;;  %4795 = vrcp.f32 %v2232_v21  ;;  %v2306_v29 = vadd.f32 1.0, %v4768_v25  ;;  %v448_v21 = vld [vmem:[%s5300_s11 + $0x170] sm:$0xff] }
 0x17b   : > { %v4772_v30 = vpop.eup %4771  ;;  %4797 = vrcp.f32 %v2235_v26  ;;  %v2233_v27 = vadd.f32 1.0, %v4770_v28 }
 0x17c   : > { %v4774_v32 = vpop.eup %4773  ;;  %4799 = vrcp.f32 %v2306_v29  ;;  %v2304_v34 = vadd.f32 1.0, %v4772_v30  ;;  %3288 = vperm.xlu0 %4426, %v4752_v5   ;;  %v517_v5 = vld [vmem:[%s5300_s11 + $0x398] sm:$0xff]  ;;  %v446_v30 = vld [vmem:[%s5300_s11 + $0x160] sm:$0xff] }
 0x17d   : > { %v4776_v33 = vpop.eup %4775  ;;  %4801 = vrcp.f32 %v2233_v27  ;;  %v2307_v36 = vadd.f32 1.0, %v4774_v32  ;;  %3293 = vperm.xlu1 %4425, %v4758_v15   ;;  %v1357_v15 = vadd.f32 %v1356_v35, %v443_v59  ;;  %v1653_v26 = vadd.f32 %v5494_v31, %v517_v5  ;;  %v2707_v35 = vld [vmem:[%s5500_s14 + $0x258] sm:$0xff] }
 0x17e   : > { %v4778_v38 = vpop.eup %4777  ;;  %4803 = vrcp.f32 %v2304_v34  ;;  %v2305_v39 = vadd.f32 1.0, %v4776_v33  ;;  %v4138_v27 = vmul.f32 -1.442695, %v1650_v6  ;;  %v1645_v32 = vadd.f32 %v5506_v45, %v515_v14  ;;  %v520_v33 = vld [vmem:[%s5300_s11 + $0x3b0] sm:$0xff]  ;;  %v2639_v14 = vld [vmem:[%s5500_s14 + $0x38] sm:$0xff] }
 0x17f   : > { %v4780_v41 = vpop.eup %4779  ;;  %4805 = vrcp.f32 %v2307_v36  ;;  %v2238_v42 = vadd.f32 1.0, %v4778_v38  ;;  %v4065_v38 = vmul.f32 -1.442695, %v1357_v15  ;;  %v1378_v31 = vadd.f32 %v5503_v40, %v448_v21 }
 0x180   : > { %v4782_v46 = vpop.eup %4781  ;;  %4807 = vrcp.f32 %v2305_v39  ;;  %v2236_v43 = vadd.f32 1.0, %v4780_v41  ;;  %2918 = vperm.xlu0 %4426, %v5478_v0   ;;  %v514_v0 = vld [vmem:[%s5300_s11 + $0x380] sm:$0xff]  ;;  %v4379_v41 = vpop.f32.mrf.mxu1  ;;  %v4139_v40 = vmul.f32 -1.442695, %v1653_v26  ;;  %v1666_v49 = vadd.f32 %v5515_v56, %v520_v33 }
 0x181   : > { %v4784_v50 = vpop.eup %4783  ;;  %4809 = vrcp.f32 %v2238_v42  ;;  %v2239_v51 = vadd.f32 1.0, %v4782_v46  ;;  %2923 = vperm.xlu1 %4425, %v5482_v9   ;;  %v1642_v20 = vadd.f32 %v5492_v22, %v514_v0  ;;  %v2704_v39 = vld [vmem:[%s5500_s14 + $0x240] sm:$0xff]  ;;  %v1370_v46 = vadd.f32 %v5525_v62, %v446_v30  ;;  %v2711_v30 = vld [vmem:[%s5500_s14 + $0x278] sm:$0xff] }
 0x182   : > { %v4786_v53 = vpop.eup %4785  ;;  %4811 = vrcp.f32 %v2236_v43  ;;  %v2310_v57 = vadd.f32 1.0, %v4784_v50  ;;  %v2789_v60 = vpop.permute.xlu1 %2788  ;;  %v1381_v59 = vadd.f32 %v4307_v24, %v449_v37 }
 0x183   : > { %v4788_v61 = vpop.eup %4787  ;;  %4813 = vrcp.f32 %v2239_v51  ;;  %v2237_v63 = vadd.f32 1.0, %v4786_v53  ;;  %v3149_v1 = vpop.permute.xlu0 %3148  ;;  %v3498_v2 = vmul.f32 %v2789_v60, %v2634_v48  ;;  %v4136_v44 = vmul.f32 -1.442695, %v1642_v20  ;;  %v521_v60 = vld [vmem:[%s5300_s11 + $0x3b8] sm:$0xff] }
 0x184   : > { %v4790_v3 = vpop.eup %4789  ;;  %4815 = vrcp.f32 %v2310_v57  ;;  %v2308_v4 = vadd.f32 1.0, %v4788_v61  ;;  %v3570_v7 = vmul.f32 %v3149_v1, %v2706_v54  ;;  %3278 = vperm.xlu0 %4426, %v5484_v11   ;;  %v1372_v43 = vpop.f32.mrf.mxu0  ;;  %v4137_v53 = vmul.f32 -1.442695, %v1645_v32 }
 0x185   : > { %v4792_v9 = vpop.eup %4791  ;;  %4817 = vrcp.f32 %v2237_v63  ;;  %v2311_v10 = vadd.f32 1.0, %v4790_v3  ;;  %3643 = vst.msk [vmem:[%s5523_s18 + $0x10] sm:$0xff] %vm3640_vm1, %v3498_v2  ;;  %3283 = vperm.xlu1 %4425, %v5490_v17   ;;  %v4067_v17 = vmul.f32 -1.442695, %v1365_v55  ;;  %v4070_v61 = vmul.f32 -1.442695, %v1378_v31  ;;  %v1660_v3 = vpop.f32.mrf.mxu1 }
 0x186   : > { %v4794_v13 = vpop.eup %4793  ;;  %4819 = vrcp.f32 %v2308_v4  ;;  %v2309_v11 = vadd.f32 1.0, %v4792_v9  ;;  %3715 = vst.msk [vmem:[%s5523_s18 + $0x250] sm:$0xff] %vm3640_vm1, %v3570_v7  ;;  %v2794_v23 = vpop.permute.xlu1 %2793  ;;  %v2633_v63 = vld [vmem:[%s5500_s14 + $0x8] sm:$0xff]  ;;  %v1373_v55 = vadd.f32 %v1372_v43, %v447_v47  ;;  %v4068_v0 = vmul.f32 -1.442695, %v1370_v46 }
 0x187   : > { %v5543_v25 = vpop.eup %4795  ;;  %4821 = vrcp.f32 %v2311_v10  ;;  %v3499_v28 = vmul.f32 %v2794_v23, %v2635_v8  ;;  %v2779_v29 = vpop.permute.xlu0 %2778  ;;  %v1658_v2 = vadd.f32 %v5537_v18, %v518_v52  ;;  %v519_v4 = vld [vmem:[%s5300_s11 + $0x3a8] sm:$0xff]  ;;  %v4142_v7 = vmul.f32 -1.442695, %v1666_v49 }
 0x188   : > { %v4798_v22 = vpop.eup %4797  ;;  %4823 = vrcp.f32 %v2309_v11  ;;  %v3496_v34 = vmul.f32 %v2779_v29, %v2632_v16  ;;  %2948 = vperm.xlu0 %4426, %v4794_v13   ;;  %v1669_v9 = vadd.f32 %v4379_v41, %v521_v60  ;;  %v5576_v16 = vpop.f32.mrf.mxu0  ;;  %v4069_v13 = vmul.f32 -1.442695, %v1373_v55  ;;  %v2638_v11 = vld [vmem:[%s5500_s14 + $0x30] sm:$0xff]  ;;  %v2709_v60 = vld [vmem:[%s5500_s14 + $0x268] sm:$0xff] }
 0x189   : > { %v4800_v36 = vpop.eup %4799  ;;  %4825 = vpow2.f32 %v4066_v12  ;;  %3644 = vst.msk [vmem:[%s5523_s18 + $0x18] sm:$0xff] %vm3640_vm1, %v3499_v28  ;;  %2953 = vperm.xlu1 %4425, %v4798_v22   ;;  %v4071_v12 = vmul.f32 -1.442695, %v1381_v59  ;;  %v4140_v23 = vmul.f32 -1.442695, %v1658_v2  ;;  %v5603_v46 = vpop.f32.mrf.mxu1 }
 0x18a   : > { %v4802_v42 = vpop.eup %4801  ;;  %4827 = vpow2.f32 %v4064_v19  ;;  %3641 = vst.msk [vmem:[%s5523_s18] sm:$0xff] %vm3640_vm1, %v3496_v34  ;;  %v3154_v45 = vpop.permute.xlu1 %3153  ;;  %v1661_v19 = vadd.f32 %v1660_v3, %v519_v4  ;;  %v2710_v34 = vld [vmem:[%s5500_s14 + $0x270] sm:$0xff] }
 0x18b   : > { %v5559_v48 = vpop.eup %4803  ;;  %4829 = vpow2.f32 %v4067_v17  ;;  %v3571_v50 = vmul.f32 %v3154_v45, %v2707_v35  ;;  %v3139_v51 = vpop.permute.xlu0 %3138 }
 0x18c   : > { %v4806_v54 = vpop.eup %4805  ;;  %4831 = vpow2.f32 %v4138_v27  ;;  %v3568_v57 = vmul.f32 %v3139_v51, %v2704_v39  ;;  %3308 = vperm.xlu0 %4426, %v4800_v36   ;;  %v5591_v22 = vpop.f32.mrf.mxu0  ;;  %v4141_v32 = vmul.f32 -1.442695, %v1661_v19 }
 0x18d   : > { %v4808_v62 = vpop.eup %4807  ;;  %4833 = vpow2.f32 %v4065_v38  ;;  %3716 = vst.msk [vmem:[%s5523_s18 + $0x258] sm:$0xff] %vm3640_vm1, %v3571_v50  ;;  %3313 = vperm.xlu1 %4425, %v4806_v54  }
 0x18e   : > { %v4810_v56 = vpop.eup %4809  ;;  %4835 = vpow2.f32 %v4136_v44  ;;  %3713 = vst.msk [vmem:[%s5523_s18 + $0x240] sm:$0xff] %vm3640_vm1, %v3568_v57  ;;  %v3144_v1 = vpop.permute.xlu1 %3143  ;;  %v2637_v44 = vld [vmem:[%s5500_s14 + $0x28] sm:$0xff] }
 0x18f   : > { %v5572_v6 = vpop.eup %4811  ;;  %4837 = vpow2.f32 %v4139_v40  ;;  %v3569_v5 = vmul.f32 %v3144_v1, %v2705_v58  ;;  %v2784_v8 = vpop.permute.xlu0 %2783 }
 0x190   : > { %v4814_v10 = vpop.eup %4813  ;;  %4839 = vpow2.f32 %v4137_v53  ;;  %v3497_v15 = vmul.f32 %v2784_v8, %v2633_v63  ;;  %2938 = vperm.xlu0 %4426, %v5543_v25   ;;  %v4143_v25 = vmul.f32 -1.442695, %v1669_v9  ;;  %v5601_v45 = vpop.f32.mrf.mxu0  ;;  %v450_v8 = vld [vmem:[%s5300_s11 + $0x180] sm:$0xff] }
 0x191   : > { %v5578_v18 = vpop.eup %4815  ;;  %4841 = vpow2.f32 %v4070_v61  ;;  %3714 = vst.msk [vmem:[%s5523_s18 + $0x248] sm:$0xff] %vm3640_vm1, %v3569_v5  ;;  %2943 = vperm.xlu1 %4425, %v4802_v42   ;;  %v5612_v61 = vpop.f32.mrf.mxu1 }
 0x192   : > { %v5583_v20 = vpop.eup %4817  ;;  %4843 = vpow2.f32 %v4068_v0  ;;  %3642 = vst.msk [vmem:[%s5523_s18 + $0x8] sm:$0xff] %vm3640_vm1, %v3497_v15  ;;  %v2814_v21 = vpop.permute.xlu1 %2813  ;;  %v2708_v0 = vld [vmem:[%s5500_s14 + $0x260] sm:$0xff] }
 0x193   : > { %v5587_v24 = vpop.eup %4819  ;;  %4845 = vpow2.f32 %v4142_v7  ;;  %v3503_v17 = vmul.f32 %v2814_v21, %v2639_v14  ;;  %v2809_v26 = vpop.permute.xlu0 %2808 }
 0x194   : > { %v4822_v28 = vpop.eup %4821  ;;  %4847 = vpow2.f32 %v4071_v12  ;;  %v3502_v29 = vmul.f32 %v2809_v26, %v2638_v11  ;;  %3298 = vperm.xlu0 %4426, %v5559_v48   ;;  %v2636_v48 = vld [vmem:[%s5500_s14 + $0x20] sm:$0xff]  ;;  %v4383_v19 = vpop.f32.mrf.mxu1  ;;  %v1386_v26 = vadd.f32 %v5591_v22, %v450_v8  ;;  %v2641_v8 = vld [vmem:[%s5500_s14 + $0x48] sm:$0xff] }
 0x195   : > { %v5593_v27 = vpop.eup %4823  ;;  %4849 = vpow2.f32 %v4069_v13  ;;  %3648 = vst.msk [vmem:[%s5523_s18 + $0x38] sm:$0xff] %vm3640_vm1, %v3503_v17  ;;  %3303 = vperm.xlu1 %4425, %v4808_v62   ;;  %v1388_v62 = vpop.f32.mrf.mxu0  ;;  %v524_v13 = vld [vmem:[%s5300_s11 + $0x3d0] sm:$0xff] }
 0x196   : > { %v4826_v35 = vpop.eup %4825  ;;  %4851 = vpow2.f32 %v4140_v23  ;;  %3647 = vst.msk [vmem:[%s5523_s18 + $0x30] sm:$0xff] %vm3640_vm1, %v3502_v29  ;;  %v3174_v33 = vpop.permute.xlu1 %3173 }
 0x197   : > { %v4828_v36 = vpop.eup %4827  ;;  %v2242_v38 = vadd.f32 1.0, %v4826_v35  ;;  %4853 = vpow2.f32 %v4143_v25  ;;  %v3575_v31 = vmul.f32 %v3174_v33, %v2711_v30  ;;  %v3169_v39 = vpop.permute.xlu0 %3168  ;;  %v2642_v25 = vld [vmem:[%s5500_s14 + $0x50] sm:$0xff]  ;;  %v1682_v35 = vadd.f32 %v5603_v46, %v524_v13  ;;  %v523_v46 = vld [vmem:[%s5300_s11 + $0x3c8] sm:$0xff] }
 0x198   : > { %v4830_v37 = vpop.eup %4829  ;;  %v2240_v41 = vadd.f32 1.0, %v4828_v36  ;;  %v3574_v42 = vmul.f32 %v3169_v39, %v2710_v34  ;;  %2968 = vperm.xlu0 %4426, %v4810_v56   ;;  %4855 = vpow2.f32 %v4141_v32  ;;  %v452_v56 = vld [vmem:[%s5300_s11 + $0x190] sm:$0xff]  ;;  %v5620_v4 = vpop.f32.mrf.mxu0 }
 0x199   : > { %v4832_v43 = vpop.eup %4831  ;;  %v2243_v47 = vadd.f32 1.0, %v4830_v37  ;;  %3720 = vst.msk [vmem:[%s5523_s18 + $0x278] sm:$0xff] %vm3640_vm1, %v3575_v31  ;;  %2973 = vperm.xlu1 %4425, %v4814_v10   ;;  %4857 = vrcp.f32 %v2242_v38  ;;  %v1394_v14 = vadd.f32 %v5576_v16, %v452_v56  ;;  %v525_v31 = vld [vmem:[%s5300_s11 + $0x3d8] sm:$0xff] }
 0x19a   : > { %v4834_v40 = vpop.eup %4833  ;;  %v2314_v50 = vadd.f32 1.0, %v4832_v43  ;;  %3719 = vst.msk [vmem:[%s5523_s18 + $0x270] sm:$0xff] %vm3640_vm1, %v3574_v42  ;;  %v2804_v51 = vpop.permute.xlu1 %2803  ;;  %v2714_v43 = vld [vmem:[%s5500_s14 + $0x290] sm:$0xff] }
 0x19b   : > { %v4836_v49 = vpop.eup %4835  ;;  %4859 = vrcp.f32 %v2243_v47  ;;  %v2241_v52 = vadd.f32 1.0, %v4834_v40  ;;  %v3501_v54 = vmul.f32 %v2804_v51, %v2637_v44  ;;  %v2799_v53 = vpop.permute.xlu0 %2798  ;;  %v4074_v38 = vmul.f32 -1.442695, %v1394_v14 }
 0x19c   : > { %v4838_v57 = vpop.eup %4837  ;;  %4861 = vrcp.f32 %v2240_v41  ;;  %v2312_v58 = vadd.f32 1.0, %v4836_v49  ;;  %v3500_v59 = vmul.f32 %v2799_v53, %v2636_v48  ;;  %3328 = vperm.xlu0 %4426, %v5578_v18   ;;  %v453_v18 = vld [vmem:[%s5300_s11 + $0x198] sm:$0xff]  ;;  %v1401_v29 = vpop.f32.mrf.mxu0  ;;  %v4072_v48 = vmul.f32 -1.442695, %v1386_v26 }
 0x19d   : > { %v4840_v63 = vpop.eup %4839  ;;  %4863 = vrcp.f32 %v2314_v50  ;;  %v2315_v55 = vadd.f32 1.0, %v4838_v57  ;;  %3646 = vst.msk [vmem:[%s5523_s18 + $0x28] sm:$0xff] %vm3640_vm1, %v3501_v54  ;;  %3333 = vperm.xlu1 %4425, %v4822_v28   ;;  %v451_v28 = vld [vmem:[%s5300_s11 + $0x188] sm:$0xff]  ;;  %v1397_v34 = vadd.f32 %v5601_v45, %v453_v18  ;;  %v1676_v41 = vpop.f32.mrf.mxu1  ;;  %v456_v50 = vld [vmem:[%s5300_s11 + $0x1b0] sm:$0xff]  ;;  %v1685_v54 = vadd.f32 %v4383_v19, %v525_v31  ;;  %v454_v57 = vld [vmem:[%s5300_s11 + $0x1a0] sm:$0xff] }
 0x19e   : > { %v4842_v1 = vpop.eup %4841  ;;  %4865 = vrcp.f32 %v2241_v52  ;;  %v2313_v2 = vadd.f32 1.0, %v4840_v63  ;;  %3645 = vst.msk [vmem:[%s5523_s18 + $0x20] sm:$0xff] %vm3640_vm1, %v3500_v59  ;;  %v3164_v3 = vpop.permute.xlu1 %3163  ;;  %v1389_v44 = vadd.f32 %v1388_v62, %v451_v28  ;;  %v4146_v59 = vmul.f32 -1.442695, %v1682_v35  ;;  %v457_v63 = vld [vmem:[%s5300_s11 + $0x1b8] sm:$0xff] }
 0x19f   : > { %v4844_v7 = vpop.eup %4843  ;;  %4867 = vrcp.f32 %v2315_v55  ;;  %v2246_v5 = vadd.f32 1.0, %v4842_v1  ;;  %v3573_v9 = vmul.f32 %v3164_v3, %v2709_v60  ;;  %v3159_v10 = vpop.permute.xlu0 %3158  ;;  %v1677_v60 = vadd.f32 %v1676_v41, %v523_v46  ;;  %v528_v3 = vld [vmem:[%s5300_s11 + $0x3f0] sm:$0xff] }
 0x1a0   : > { %v4846_v12 = vpop.eup %4845  ;;  %4869 = vrcp.f32 %v2312_v58  ;;  %v2244_v15 = vadd.f32 1.0, %v4844_v7  ;;  %v3572_v11 = vmul.f32 %v3159_v10, %v2708_v0  ;;  %2958 = vperm.xlu0 %4426, %v5572_v6   ;;  %v2643_v6 = vld [vmem:[%s5500_s14 + $0x58] sm:$0xff]  ;;  %v4315_v51 = vpop.f32.mrf.mxu0  ;;  %v4073_v56 = vmul.f32 -1.442695, %v1389_v44  ;;  %v2646_v46 = vld [vmem:[%s5500_s14 + $0x70] sm:$0xff] }
 0x1a1   : > { %v4848_v23 = vpop.eup %4847  ;;  %4871 = vrcp.f32 %v2313_v2  ;;  %v2318_v21 = vadd.f32 1.0, %v4846_v12  ;;  %3718 = vst.msk [vmem:[%s5523_s18 + $0x268] sm:$0xff] %vm3640_vm1, %v3573_v9  ;;  %2963 = vperm.xlu1 %4425, %v5583_v20   ;;  %v522_v20 = vld [vmem:[%s5300_s11 + $0x3c0] sm:$0xff]  ;;  %v4386_v49 = vpop.f32.mrf.mxu1  ;;  %v1410_v1 = vadd.f32 %v5620_v4, %v456_v50  ;;  %v1402_v9 = vadd.f32 %v1401_v29, %v454_v57  ;;  %v455_v12 = vld [vmem:[%s5300_s11 + $0x1a8] sm:$0xff] }
 0x1a2   : > { %v4850_v17 = vpop.eup %4849  ;;  %4873 = vrcp.f32 %v2246_v5  ;;  %v2247_v16 = vadd.f32 1.0, %v4848_v23  ;;  %3717 = vst.msk [vmem:[%s5523_s18 + $0x260] sm:$0xff] %vm3640_vm1, %v3572_v11  ;;  %v1674_v40 = vadd.f32 %v5612_v61, %v522_v20  ;;  %v2640_v2 = vld [vmem:[%s5500_s14 + $0x40] sm:$0xff]  ;;  %v1404_v10 = vpop.f32.mrf.mxu0  ;;  %v4147_v18 = vmul.f32 -1.442695, %v1685_v54  ;;  %v527_v50 = vld [vmem:[%s5300_s11 + $0x3e8] sm:$0xff] }
 0x1a3   : > { %v4852_v30 = vpop.eup %4851  ;;  %4875 = vrcp.f32 %v2244_v15  ;;  %v2245_v32 = vadd.f32 1.0, %v4850_v17  ;;  %v2829_v33 = vpop.permute.xlu0 %2828  ;;  %v1413_v13 = vadd.f32 %v4315_v51, %v457_v63  ;;  %v4145_v19 = vmul.f32 -1.442695, %v1677_v60  ;;  %v529_v17 = vld [vmem:[%s5300_s11 + $0x3f8] sm:$0xff] }
 0x1a4   : > { %v4854_v36 = vpop.eup %4853  ;;  %4877 = vrcp.f32 %v2318_v21  ;;  %v2316_v22 = vadd.f32 1.0, %v4852_v30  ;;  %v2834_v39 = vpop.permute.xlu1 %2833  ;;  %v3506_v37 = vmul.f32 %v2829_v33, %v2642_v25  ;;  %3318 = vperm.xlu0 %4426, %v5587_v24   ;;  %v2715_v24 = vld [vmem:[%s5500_s14 + $0x298] sm:$0xff]  ;;  %v4144_v5 = vmul.f32 -1.442695, %v1674_v40 }
 0x1a5   : > { %4879 = vrcp.f32 %v2247_v16  ;;  %v2319_v42 = vadd.f32 1.0, %v4854_v36  ;;  %v3507_v45 = vmul.f32 %v2834_v39, %v2643_v6  ;;  %3323 = vperm.xlu1 %4425, %v5593_v27   ;;  %v5644_v47 = vpop.eup %4855  ;;  %v4075_v27 = vmul.f32 -1.442695, %v1397_v34  ;;  %v1689_v15 = vpop.f32.mrf.mxu1  ;;  %v2712_v6 = vld [vmem:[%s5500_s14 + $0x280] sm:$0xff]  ;;  %v2713_v34 = vld [vmem:[%s5500_s14 + $0x288] sm:$0xff]  ;;  %v2647_v40 = vld [vmem:[%s5500_s14 + $0x78] sm:$0xff] }
 0x1a6   : > { %4881 = vrcp.f32 %v2245_v32  ;;  %3651 = vst.msk [vmem:[%s5523_s18 + $0x50] sm:$0xff] %vm3640_vm1, %v3506_v37  ;;  %v4858_v52 = vpop.eup %4857  ;;  %v1698_v25 = vadd.f32 %v4386_v49, %v528_v3  ;;  %v4078_v26 = vmul.f32 -1.442695, %v1410_v1  ;;  %v1405_v29 = vadd.f32 %v1404_v10, %v455_v12  ;;  %v5688_v57 = vpop.f32.mrf.mxu0  ;;  %v2719_v63 = vld [vmem:[%s5500_s14 + $0x2b8] sm:$0xff] }
 0x1a7   : > { %4883 = vrcp.f32 %v2316_v22  ;;  %3652 = vst.msk [vmem:[%s5523_s18 + $0x58] sm:$0xff] %vm3640_vm1, %v3507_v45  ;;  %v3189_v53 = vpop.permute.xlu0 %3188  ;;  %v4076_v32 = vmul.f32 -1.442695, %v1402_v9  ;;  %v4387_v35 = vpop.f32.mrf.mxu1  ;;  %v4079_v33 = vmul.f32 -1.442695, %v1413_v13  ;;  %v526_v45 = vld [vmem:[%s5300_s11 + $0x3e0] sm:$0xff] }
 0x1a8   : > { %v4860_v58 = vpop.eup %4859  ;;  %4885 = vrcp.f32 %v2319_v42  ;;  %v3194_v62 = vpop.permute.xlu1 %3193  ;;  %v3578_v61 = vmul.f32 %v3189_v53, %v2714_v43  ;;  %2988 = vperm.xlu0 %4426, %v4858_v52   ;;  %v1701_v22 = vadd.f32 %v4387_v35, %v529_v17  ;;  %v4150_v31 = vmul.f32 -1.442695, %v1698_v25  ;;  %v2645_v13 = vld [vmem:[%s5500_s14 + $0x68] sm:$0xff] }
 0x1a9   : > { %v4862_v55 = vpop.eup %4861  ;;  %4887 = vpow2.f32 %v4074_v38  ;;  %v3579_v0 = vmul.f32 %v3194_v62, %v2715_v24  ;;  %2993 = vperm.xlu1 %4425, %v4860_v58   ;;  %v4077_v44 = vmul.f32 -1.442695, %v1405_v29  ;;  %v1692_v24 = vpop.f32.mrf.mxu1  ;;  %v2718_v62 = vld [vmem:[%s5500_s14 + $0x2b0] sm:$0xff] }
 0x1aa   : > { %v4864_v7 = vpop.eup %4863  ;;  %4889 = vpow2.f32 %v4072_v48  ;;  %3723 = vst.msk [vmem:[%s5523_s18 + $0x290] sm:$0xff] %vm3640_vm1, %v3578_v61  ;;  %v2317_v48 = vadd.f32 1.0, %v5644_v47  ;;  %v4151_v49 = vmul.f32 -1.442695, %v1701_v22  ;;  %v1690_v47 = vadd.f32 %v1689_v15, %v526_v45 }
 0x1ab   : > { %v4866_v14 = vpop.eup %4865  ;;  %4891 = vpow2.f32 %v4075_v27  ;;  %3724 = vst.msk [vmem:[%s5523_s18 + $0x298] sm:$0xff] %vm3640_vm1, %v3579_v0  ;;  %v2819_v4 = vpop.permute.xlu0 %2818  ;;  %v1693_v60 = vadd.f32 %v1692_v24, %v527_v50  ;;  %v532_v24 = vld [vmem:[%s5300_s11 + $0x410] sm:$0xff] }
 0x1ac   : > { %v4868_v11 = vpop.eup %4867  ;;  %4893 = vpow2.f32 %v4146_v59  ;;  %v2824_v23 = vpop.permute.xlu1 %2823  ;;  %v3504_v21 = vmul.f32 %v2819_v4, %v2640_v2  ;;  %3348 = vperm.xlu0 %4426, %v4864_v7   ;;  %v4148_v3 = vmul.f32 -1.442695, %v1690_v47 }
 0x1ad   : > { %v4870_v16 = vpop.eup %4869  ;;  %4895 = vpow2.f32 %v4073_v56  ;;  %v3505_v28 = vmul.f32 %v2824_v23, %v2641_v8  ;;  %3353 = vperm.xlu1 %4425, %v4868_v11   ;;  %v5696_v1 = vpop.f32.mrf.mxu1  ;;  %v4149_v12 = vmul.f32 -1.442695, %v1693_v60  ;;  %v459_v60 = vld [vmem:[%s5300_s11 + $0x1c8] sm:$0xff] }
 0x1ae   : > { %v4872_v30 = vpop.eup %4871  ;;  %4897 = vpow2.f32 %v4144_v5  ;;  %3649 = vst.msk [vmem:[%s5523_s18 + $0x40] sm:$0xff] %vm3640_vm1, %v3504_v21  ;;  %v5698_v8 = vpop.f32.mrf.mxu0 }
 0x1af   : > { %v4874_v20 = vpop.eup %4873  ;;  %4899 = vpow2.f32 %v4147_v18  ;;  %3650 = vst.msk [vmem:[%s5523_s18 + $0x48] sm:$0xff] %vm3640_vm1, %v3505_v28  ;;  %v3179_v36 = vpop.permute.xlu0 %3178 }
 0x1b0   : > { %v5671_v38 = vpop.eup %4875  ;;  %4901 = vpow2.f32 %v4145_v19  ;;  %v3184_v39 = vpop.permute.xlu1 %3183  ;;  %v3576_v37 = vmul.f32 %v3179_v36, %v2712_v6  ;;  %2978 = vperm.xlu0 %4426, %v4862_v55  }
 0x1b1   : > { %v5673_v41 = vpop.eup %4877  ;;  %4903 = vpow2.f32 %v4078_v26  ;;  %v3577_v42 = vmul.f32 %v3184_v39, %v2713_v34  ;;  %2983 = vperm.xlu1 %4425, %v4866_v14   ;;  %v2644_v14 = vld [vmem:[%s5500_s14 + $0x60] sm:$0xff]  ;;  %v5706_v23 = vpop.f32.mrf.mxu1 }
 0x1b2   : > { %v4880_v43 = vpop.eup %4879  ;;  %4905 = vpow2.f32 %v4076_v32  ;;  %3721 = vst.msk [vmem:[%s5523_s18 + $0x280] sm:$0xff] %vm3640_vm1, %v3576_v37  ;;  %v4319_v26 = vpop.f32.mrf.mxu0  ;;  %v2716_v32 = vld [vmem:[%s5500_s14 + $0x2a0] sm:$0xff] }
 0x1b3   : > { %v5682_v51 = vpop.eup %4881  ;;  %4907 = vpow2.f32 %v4079_v33  ;;  %3722 = vst.msk [vmem:[%s5523_s18 + $0x288] sm:$0xff] %vm3640_vm1, %v3577_v42  ;;  %v2849_v52 = vpop.permute.xlu0 %2848  ;;  %v2717_v33 = vld [vmem:[%s5500_s14 + $0x2a8] sm:$0xff]  ;;  %v461_v42 = vld [vmem:[%s5300_s11 + $0x1d8] sm:$0xff] }
 0x1b4   : > { %v5686_v27 = vpop.eup %4883  ;;  %4909 = vpow2.f32 %v4150_v31  ;;  %v2854_v54 = vpop.permute.xlu1 %2853  ;;  %v3510_v53 = vmul.f32 %v2849_v52, %v2646_v46  ;;  %3338 = vperm.xlu0 %4426, %v4870_v16  }
 0x1b5   : > { %v4886_v58 = vpop.eup %4885  ;;  %4911 = vpow2.f32 %v4077_v44  ;;  %v3511_v59 = vmul.f32 %v2854_v54, %v2647_v40  ;;  %3343 = vperm.xlu1 %4425, %v4872_v30   ;;  %v4391_v39 = vpop.f32.mrf.mxu1  ;;  %v458_v54 = vld [vmem:[%s5300_s11 + $0x1c0] sm:$0xff] }
 0x1b6   : > { %v4888_v61 = vpop.eup %4887  ;;  %4913 = vrcp.f32 %v2317_v48  ;;  %3655 = vst.msk [vmem:[%s5523_s18 + $0x70] sm:$0xff] %vm3640_vm1, %v3510_v53  ;;  %v1420_v46 = vpop.f32.mrf.mxu0 }
 0x1b7   : > { %v4890_v55 = vpop.eup %4889  ;;  %v2250_v56 = vadd.f32 1.0, %v4888_v61  ;;  %4915 = vpow2.f32 %v4151_v49  ;;  %3656 = vst.msk [vmem:[%s5523_s18 + $0x78] sm:$0xff] %vm3640_vm1, %v3511_v59  ;;  %v3209_v0 = vpop.permute.xlu0 %3208  ;;  %v2650_v49 = vld [vmem:[%s5500_s14 + $0x90] sm:$0xff] }
 0x1b8   : > { %v4892_v2 = vpop.eup %4891  ;;  %v3214_v7 = vpop.permute.xlu1 %3213  ;;  %v3582_v5 = vmul.f32 %v3209_v0, %v2718_v62  ;;  %3008 = vperm.xlu0 %4426, %v4874_v20   ;;  %v2248_v25 = vadd.f32 1.0, %v4890_v55  ;;  %v460_v20 = vld [vmem:[%s5300_s11 + $0x1d0] sm:$0xff]  ;;  %v533_v55 = vld [vmem:[%s5300_s11 + $0x418] sm:$0xff] }
 0x1b9   : > { %v4894_v9 = vpop.eup %4893  ;;  %v2251_v10 = vadd.f32 1.0, %v4892_v2  ;;  %v3583_v15 = vmul.f32 %v3214_v7, %v2719_v63  ;;  %3013 = vperm.xlu1 %4425, %v4880_v43   ;;  %4917 = vrcp.f32 %v2250_v56  ;;  %v1426_v40 = vadd.f32 %v5688_v57, %v460_v20  ;;  %v4322_v53 = vpop.f32.mrf.mxu0 }
 0x1ba   : > { %v4896_v18 = vpop.eup %4895  ;;  %v2322_v4 = vadd.f32 1.0, %v4894_v9  ;;  %3727 = vst.msk [vmem:[%s5523_s18 + $0x2b0] sm:$0xff] %vm3640_vm1, %v3582_v5  ;;  %v1429_v57 = vadd.f32 %v4319_v26, %v461_v42  ;;  %v1714_v63 = vadd.f32 %v5696_v1, %v532_v24  ;;  %v1708_v2 = vpop.f32.mrf.mxu1  ;;  %v1418_v7 = vadd.f32 %v5698_v8, %v458_v54  ;;  %v530_v5 = vld [vmem:[%s5300_s11 + $0x400] sm:$0xff] }
 0x1bb   : > { %v4898_v11 = vpop.eup %4897  ;;  %4919 = vrcp.f32 %v2251_v10  ;;  %3728 = vst.msk [vmem:[%s5523_s18 + $0x2b8] sm:$0xff] %vm3640_vm1, %v3583_v15  ;;  %v2839_v19 = vpop.permute.xlu0 %2838  ;;  %v2249_v6 = vadd.f32 1.0, %v4896_v18  ;;  %v2722_v10 = vld [vmem:[%s5500_s14 + $0x2d0] sm:$0xff]  ;;  %v531_v15 = vld [vmem:[%s5300_s11 + $0x408] sm:$0xff] }
 0x1bc   : > { %v4900_v21 = vpop.eup %4899  ;;  %4921 = vpow2.f32 %v4148_v3  ;;  %v2844_v17 = vpop.permute.xlu1 %2843  ;;  %v3508_v16 = vmul.f32 %v2839_v19, %v2644_v14  ;;  %3368 = vperm.xlu0 %4426, %v5673_v41   ;;  %v2320_v35 = vadd.f32 1.0, %v4898_v11  ;;  %v4082_v3 = vmul.f32 -1.442695, %v1426_v40  ;;  %v2723_v14 = vld [vmem:[%s5500_s14 + $0x2d8] sm:$0xff]  ;;  %v464_v19 = vld [vmem:[%s5300_s11 + $0x1f0] sm:$0xff] }
 0x1bd   : > { %v4902_v28 = vpop.eup %4901  ;;  %v2323_v29 = vadd.f32 1.0, %v4900_v21  ;;  %4923 = vpow2.f32 %v4149_v12  ;;  %v3509_v30 = vmul.f32 %v2844_v17, %v2645_v13  ;;  %3373 = vperm.xlu1 %4425, %v4886_v58   ;;  %v1421_v12 = vadd.f32 %v1420_v46, %v459_v60  ;;  %v5739_v18 = vpop.f32.mrf.mxu0  ;;  %v537_v40 = vld [vmem:[%s5300_s11 + $0x438] sm:$0xff] }
 0x1be   : > { %v4904_v34 = vpop.eup %4903  ;;  %4925 = vrcp.f32 %v2322_v4  ;;  %3653 = vst.msk [vmem:[%s5523_s18 + $0x60] sm:$0xff] %vm3640_vm1, %v3508_v16  ;;  %v2321_v22 = vadd.f32 1.0, %v4902_v28  ;;  %v4083_v8 = vmul.f32 -1.442695, %v1429_v57  ;;  %v1717_v13 = vadd.f32 %v4391_v39, %v533_v55  ;;  %v465_v28 = vld [vmem:[%s5300_s11 + $0x1f8] sm:$0xff] }
 0x1bf   : > { %v4906_v36 = vpop.eup %4905  ;;  %4927 = vrcp.f32 %v2323_v29  ;;  %3654 = vst.msk [vmem:[%s5523_s18 + $0x68] sm:$0xff] %vm3640_vm1, %v3509_v30  ;;  %v3199_v31 = vpop.permute.xlu0 %3198  ;;  %v2254_v41 = vadd.f32 1.0, %v4904_v34  ;;  %v1706_v17 = vadd.f32 %v5706_v23, %v530_v5  ;;  %v4080_v29 = vmul.f32 -1.442695, %v1418_v7  ;;  %v2648_v34 = vld [vmem:[%s5500_s14 + $0x80] sm:$0xff]  ;;  %v2654_v7 = vld [vmem:[%s5500_s14 + $0xb0] sm:$0xff] }
 0x1c0   : > { %v4908_v37 = vpop.eup %4907  ;;  %4929 = vrcp.f32 %v2248_v25  ;;  %v3204_v44 = vpop.permute.xlu1 %3203  ;;  %v3580_v45 = vmul.f32 %v3199_v31, %v2716_v32  ;;  %2998 = vperm.xlu0 %4426, %v5671_v38   ;;  %v2252_v48 = vadd.f32 1.0, %v4906_v36  ;;  %v2651_v38 = vld [vmem:[%s5500_s14 + $0x98] sm:$0xff]  ;;  %v4154_v25 = vmul.f32 -1.442695, %v1714_v63  ;;  %v2649_v36 = vld [vmem:[%s5500_s14 + $0x88] sm:$0xff] }
 0x1c1   : > { %v4910_v43 = vpop.eup %4909  ;;  %4931 = vrcp.f32 %v2249_v6  ;;  %v3581_v50 = vmul.f32 %v3204_v44, %v2717_v33  ;;  %3003 = vperm.xlu1 %4425, %v5682_v51   ;;  %v2255_v47 = vadd.f32 1.0, %v4908_v37  ;;  %v1709_v30 = vadd.f32 %v1708_v2, %v531_v15 }
 0x1c2   : > { %v4912_v52 = vpop.eup %4911  ;;  %4933 = vrcp.f32 %v2320_v35  ;;  %3725 = vst.msk [vmem:[%s5523_s18 + $0x2a0] sm:$0xff] %vm3640_vm1, %v3580_v45  ;;  %v2326_v59 = vadd.f32 1.0, %v4910_v43  ;;  %v536_v35 = vld [vmem:[%s5300_s11 + $0x430] sm:$0xff]  ;;  %v4081_v33 = vmul.f32 -1.442695, %v1421_v12  ;;  %v1442_v23 = vadd.f32 %v4322_v53, %v464_v19 }
 0x1c3   : > { %v4914_v58 = vpop.eup %4913  ;;  %4935 = vrcp.f32 %v2321_v22  ;;  %3726 = vst.msk [vmem:[%s5523_s18 + $0x2a8] sm:$0xff] %vm3640_vm1, %v3581_v50  ;;  %v2869_v62 = vpop.permute.xlu0 %2868  ;;  %v2253_v61 = vadd.f32 1.0, %v4912_v52  ;;  %v4155_v37 = vmul.f32 -1.442695, %v1717_v13  ;;  %v4152_v45 = vmul.f32 -1.442695, %v1706_v17 }
 0x1c4   : > { %v4916_v51 = vpop.eup %4915  ;;  %4937 = vrcp.f32 %v2254_v41  ;;  %v2874_v56 = vpop.permute.xlu1 %2873  ;;  %v3514_v0 = vmul.f32 %v2869_v62, %v2650_v49  ;;  %3358 = vperm.xlu0 %4426, %v5686_v27   ;;  %v4153_v50 = vmul.f32 -1.442695, %v1709_v30  ;;  %v2720_v52 = vld [vmem:[%s5500_s14 + $0x2c0] sm:$0xff]  ;;  %v4086_v54 = vmul.f32 -1.442695, %v1442_v23 }
 0x1c5   : > { %4939 = vrcp.f32 %v2252_v48  ;;  %v3515_v9 = vmul.f32 %v2874_v56, %v2651_v38  ;;  %3363 = vperm.xlu1 %4425, %v4914_v58   ;;  %v2327_v1 = vadd.f32 1.0, %v4916_v51  ;;  %v4394_v27 = vpop.f32.mrf.mxu1  ;;  %v4323_v22 = vpop.f32.mrf.mxu0  ;;  %v2721_v38 = vld [vmem:[%s5500_s14 + $0x2c8] sm:$0xff] }
 0x1c6   : > { %4941 = vrcp.f32 %v2255_v47  ;;  %3659 = vst.msk [vmem:[%s5523_s18 + $0x90] sm:$0xff] %vm3640_vm1, %v3514_v0  ;;  %v4918_v4 = vpop.eup %4917  ;;  %v1445_v42 = vadd.f32 %v4323_v22, %v465_v28  ;;  %v1730_v48 = vadd.f32 %v4394_v27, %v536_v35  ;;  %v462_v0 = vld [vmem:[%s5300_s11 + $0x1e0] sm:$0xff]  ;;  %v535_v28 = vld [vmem:[%s5300_s11 + $0x428] sm:$0xff] }
 0x1c7   : > { %4943 = vrcp.f32 %v2326_v59  ;;  %3660 = vst.msk [vmem:[%s5523_s18 + $0x98] sm:$0xff] %vm3640_vm1, %v3515_v9  ;;  %v3229_v11 = vpop.permute.xlu0 %3228  ;;  %v5751_v31 = vpop.f32.mrf.mxu1 }
 0x1c8   : > { %v4920_v21 = vpop.eup %4919  ;;  %4945 = vrcp.f32 %v2253_v61  ;;  %v3234_v16 = vpop.permute.xlu1 %3233  ;;  %v3586_v26 = vmul.f32 %v3229_v11, %v2722_v10  ;;  %3028 = vperm.xlu0 %4426, %v4918_v4   ;;  %v4087_v59 = vmul.f32 -1.442695, %v1445_v42  ;;  %v4158_v51 = vmul.f32 -1.442695, %v1730_v48  ;;  %v463_v10 = vld [vmem:[%s5300_s11 + $0x1e8] sm:$0xff] }
 0x1c9   : > { %v4922_v6 = vpop.eup %4921  ;;  %4947 = vpow2.f32 %v4082_v3  ;;  %v3587_v32 = vmul.f32 %v3234_v16, %v2723_v14  ;;  %3033 = vperm.xlu1 %4425, %v4920_v21   ;;  %v4395_v53 = vpop.f32.mrf.mxu1  ;;  %v2726_v16 = vld [vmem:[%s5500_s14 + $0x2f0] sm:$0xff] }
 0x1ca   : > { %v4924_v20 = vpop.eup %4923  ;;  %4949 = vrcp.f32 %v2327_v1  ;;  %3731 = vst.msk [vmem:[%s5523_s18 + $0x2d0] sm:$0xff] %vm3640_vm1, %v3586_v26  ;;  %v1733_v60 = vadd.f32 %v4395_v53, %v537_v40  ;;  %v2324_v56 = vadd.f32 1.0, %v4922_v6  ;;  %v1436_v3 = vpop.f32.mrf.mxu0  ;;  %v2655_v1 = vld [vmem:[%s5500_s14 + $0xb8] sm:$0xff] }
 0x1cb   : > { %v4926_v39 = vpop.eup %4925  ;;  %4951 = vpow2.f32 %v4083_v8  ;;  %3732 = vst.msk [vmem:[%s5523_s18 + $0x2d8] sm:$0xff] %vm3640_vm1, %v3587_v32  ;;  %v2859_v41 = vpop.permute.xlu0 %2858  ;;  %v2325_v9 = vadd.f32 1.0, %v4924_v20  ;;  %v1434_v8 = vadd.f32 %v5739_v18, %v462_v0  ;;  %v1437_v21 = vadd.f32 %v1436_v3, %v463_v10  ;;  %v2727_v6 = vld [vmem:[%s5500_s14 + $0x2f8] sm:$0xff] }
 0x1cc   : > { %v4928_v44 = vpop.eup %4927  ;;  %4953 = vpow2.f32 %v4154_v25  ;;  %v2864_v46 = vpop.permute.xlu1 %2863  ;;  %v3512_v43 = vmul.f32 %v2859_v41, %v2648_v34  ;;  %3388 = vperm.xlu0 %4426, %v4926_v39   ;;  %v4159_v15 = vmul.f32 -1.442695, %v1733_v60  ;;  %v534_v25 = vld [vmem:[%s5300_s11 + $0x420] sm:$0xff] }
 0x1cd   : > { %v4930_v24 = vpop.eup %4929  ;;  %4955 = vpow2.f32 %v4080_v29  ;;  %v3513_v49 = vmul.f32 %v2864_v46, %v2649_v36  ;;  %3393 = vperm.xlu1 %4425, %v4928_v44   ;;  %v5772_v27 = vpop.f32.mrf.mxu0  ;;  %v4084_v20 = vmul.f32 -1.442695, %v1434_v8  ;;  %v4085_v41 = vmul.f32 -1.442695, %v1437_v21 }
 0x1ce   : > { %v4932_v47 = vpop.eup %4931  ;;  %4957 = vpow2.f32 %v4081_v33  ;;  %3657 = vst.msk [vmem:[%s5523_s18 + $0x80] sm:$0xff] %vm3640_vm1, %v3512_v43  ;;  %v1724_v18 = vpop.f32.mrf.mxu1  ;;  %v1722_v33 = vadd.f32 %v5751_v31, %v534_v25  ;;  %v2653_v31 = vld [vmem:[%s5500_s14 + $0xa8] sm:$0xff]  ;;  %v466_v25 = vld [vmem:[%s5300_s11 + $0x200] sm:$0xff] }
 0x1cf   : > { %v4934_v58 = vpop.eup %4933  ;;  %4959 = vpow2.f32 %v4155_v37  ;;  %3658 = vst.msk [vmem:[%s5523_s18 + $0x88] sm:$0xff] %vm3640_vm1, %v3513_v49  ;;  %v3219_v57 = vpop.permute.xlu0 %3218  ;;  %v1725_v42 = vadd.f32 %v1724_v18, %v535_v28  ;;  %v467_v18 = vld [vmem:[%s5300_s11 + $0x208] sm:$0xff] }
 0x1d0   : > { %v4936_v62 = vpop.eup %4935  ;;  %4961 = vpow2.f32 %v4152_v45  ;;  %v3224_v61 = vpop.permute.xlu1 %3223  ;;  %v3584_v63 = vmul.f32 %v3219_v57, %v2720_v52  ;;  %3018 = vperm.xlu0 %4426, %v4930_v24   ;;  %v2652_v45 = vld [vmem:[%s5500_s14 + $0xa0] sm:$0xff]  ;;  %v4156_v49 = vmul.f32 -1.442695, %v1722_v33 }
 0x1d1   : > { %v4938_v55 = vpop.eup %4937  ;;  %4963 = vpow2.f32 %v4153_v50  ;;  %v3585_v2 = vmul.f32 %v3224_v61, %v2721_v38  ;;  %3023 = vperm.xlu1 %4425, %v4932_v47   ;;  %v5785_v34 = vpop.f32.mrf.mxu0  ;;  %v2724_v57 = vld [vmem:[%s5500_s14 + $0x2e0] sm:$0xff]  ;;  %v2725_v61 = vld [vmem:[%s5500_s14 + $0x2e8] sm:$0xff] }
 0x1d2   : > { %v5764_v5 = vpop.eup %4939  ;;  %4965 = vpow2.f32 %v4086_v54  ;;  %3729 = vst.msk [vmem:[%s5523_s18 + $0x2c0] sm:$0xff] %vm3640_vm1, %v3584_v63  ;;  %v5788_v22 = vpop.f32.mrf.mxu1 }
 0x1d3   : > { %v4942_v12 = vpop.eup %4941  ;;  %4967 = vpow2.f32 %v4087_v59  ;;  %3730 = vst.msk [vmem:[%s5523_s18 + $0x2c8] sm:$0xff] %vm3640_vm1, %v3585_v2  ;;  %v2889_v14 = vpop.permute.xlu0 %2888 }
 0x1d4   : > { %v4944_v4 = vpop.eup %4943  ;;  %4969 = vpow2.f32 %v4158_v51  ;;  %v2894_v13 = vpop.permute.xlu1 %2893  ;;  %v3518_v11 = vmul.f32 %v2889_v14, %v2654_v7  ;;  %3378 = vperm.xlu0 %4426, %v4934_v58   ;;  %v4157_v58 = vmul.f32 -1.442695, %v1725_v42  ;;  %v468_v51 = vld [vmem:[%s5300_s11 + $0x210] sm:$0xff]  ;;  %v469_v7 = vld [vmem:[%s5300_s11 + $0x218] sm:$0xff] }
 0x1d5   : > { %v5775_v19 = vpop.eup %4945  ;;  %4971 = vrcp.f32 %v2324_v56  ;;  %v3519_v17 = vmul.f32 %v2894_v13, %v2655_v1  ;;  %3383 = vperm.xlu1 %4425, %v4936_v62   ;;  %v4327_v24 = vpop.f32.mrf.mxu0  ;;  %v1458_v14 = vadd.f32 %v5772_v27, %v468_v51  ;;  %v2658_v13 = vld [vmem:[%s5500_s14 + $0xd0] sm:$0xff] }
 0x1d6   : > { %v4948_v26 = vpop.eup %4947  ;;  %4973 = vrcp.f32 %v2325_v9  ;;  %3663 = vst.msk [vmem:[%s5523_s18 + $0xb0] sm:$0xff] %vm3640_vm1, %v3518_v11  ;;  %v5796_v54 = vpop.f32.mrf.mxu1 }
 0x1d7   : > { %v4950_v29 = vpop.eup %4949  ;;  %v2258_v30 = vadd.f32 1.0, %v4948_v26  ;;  %4975 = vpow2.f32 %v4159_v15  ;;  %3664 = vst.msk [vmem:[%s5523_s18 + $0xb8] sm:$0xff] %vm3640_vm1, %v3519_v17  ;;  %v3249_v32 = vpop.permute.xlu0 %3248  ;;  %v1461_v26 = vadd.f32 %v4327_v24, %v469_v7  ;;  %v4090_v33 = vmul.f32 -1.442695, %v1458_v14  ;;  %v539_v24 = vld [vmem:[%s5300_s11 + $0x448] sm:$0xff]  ;;  %v2728_v14 = vld [vmem:[%s5500_s14 + $0x300] sm:$0xff] }
 0x1d8   : > { %v4952_v35 = vpop.eup %4951  ;;  %v3254_v23 = vpop.permute.xlu1 %3253  ;;  %v3590_v36 = vmul.f32 %v3249_v32, %v2726_v16  ;;  %3048 = vperm.xlu0 %4426, %v4938_v55  }
 0x1d9   : > { %v4954_v39 = vpop.eup %4953  ;;  %v2259_v37 = vadd.f32 1.0, %v4952_v35  ;;  %v3591_v44 = vmul.f32 %v3254_v23, %v2727_v6  ;;  %3053 = vperm.xlu1 %4425, %v4942_v12   ;;  %4977 = vrcp.f32 %v2258_v30  ;;  %v1452_v0 = vpop.f32.mrf.mxu0  ;;  %v541_v30 = vld [vmem:[%s5300_s11 + $0x458] sm:$0xff]  ;;  %v1450_v23 = vadd.f32 %v5785_v34, %v466_v25  ;;  %v471_v25 = vld [vmem:[%s5300_s11 + $0x228] sm:$0xff] }
 0x1da   : > { %v4956_v46 = vpop.eup %4955  ;;  %v2330_v43 = vadd.f32 1.0, %v4954_v39  ;;  %3735 = vst.msk [vmem:[%s5523_s18 + $0x2f0] sm:$0xff] %vm3640_vm1, %v3590_v36  ;;  %v4399_v1 = vpop.f32.mrf.mxu1  ;;  %v2730_v39 = vld [vmem:[%s5500_s14 + $0x310] sm:$0xff] }
 0x1db   : > { %v4958_v48 = vpop.eup %4957  ;;  %4979 = vrcp.f32 %v2259_v37  ;;  %3736 = vst.msk [vmem:[%s5523_s18 + $0x2f8] sm:$0xff] %vm3640_vm1, %v3591_v44  ;;  %v2879_v40 = vpop.permute.xlu0 %2878  ;;  %v2256_v62 = vadd.f32 1.0, %v4956_v46  ;;  %v4091_v46 = vmul.f32 -1.442695, %v1461_v26  ;;  %v1749_v34 = vadd.f32 %v4399_v1, %v541_v30 }
 0x1dc   : > { %v4960_v50 = vpop.eup %4959  ;;  %4981 = vpow2.f32 %v4084_v20  ;;  %v2884_v52 = vpop.permute.xlu1 %2883  ;;  %v3516_v47 = vmul.f32 %v2879_v40, %v2652_v45  ;;  %3408 = vperm.xlu0 %4426, %v4944_v4   ;;  %v2257_v55 = vadd.f32 1.0, %v4958_v48  ;;  %v540_v4 = vld [vmem:[%s5300_s11 + $0x450] sm:$0xff] }
 0x1dd   : > { %v4962_v38 = vpop.eup %4961  ;;  %v2331_v53 = vadd.f32 1.0, %v4960_v50  ;;  %4983 = vpow2.f32 %v4085_v41  ;;  %v3517_v59 = vmul.f32 %v2884_v52, %v2653_v31  ;;  %3413 = vperm.xlu1 %4425, %v4950_v29   ;;  %v5815_v17 = vpop.f32.mrf.mxu0  ;;  %v1746_v29 = vadd.f32 %v5788_v22, %v540_v4  ;;  %v2731_v22 = vld [vmem:[%s5500_s14 + $0x318] sm:$0xff] }
 0x1de   : > { %v4964_v60 = vpop.eup %4963  ;;  %4985 = vrcp.f32 %v2330_v43  ;;  %3661 = vst.msk [vmem:[%s5523_s18 + $0xa0] sm:$0xff] %vm3640_vm1, %v3516_v47  ;;  %v2328_v3 = vadd.f32 1.0, %v4962_v38  ;;  %v1740_v20 = vpop.f32.mrf.mxu1  ;;  %v1453_v41 = vadd.f32 %v1452_v0, %v467_v18  ;;  %v538_v43 = vld [vmem:[%s5300_s11 + $0x440] sm:$0xff]  ;;  %v4088_v47 = vmul.f32 -1.442695, %v1450_v23  ;;  %v2662_v23 = vld [vmem:[%s5500_s14 + $0xf0] sm:$0xff] }
 0x1df   : > { %v4966_v63 = vpop.eup %4965  ;;  %4987 = vrcp.f32 %v2331_v53  ;;  %3662 = vst.msk [vmem:[%s5523_s18 + $0xa8] sm:$0xff] %vm3640_vm1, %v3517_v59  ;;  %v3239_v56 = vpop.permute.xlu0 %3238  ;;  %v2329_v15 = vadd.f32 1.0, %v4964_v60  ;;  %v4162_v40 = vmul.f32 -1.442695, %v1746_v29  ;;  %v2656_v53 = vld [vmem:[%s5500_s14 + $0xc0] sm:$0xff]  ;;  %v2657_v60 = vld [vmem:[%s5500_s14 + $0xc8] sm:$0xff] }
 0x1e0   : > { %v4968_v2 = vpop.eup %4967  ;;  %4989 = vpow2.f32 %v4156_v49  ;;  %v3244_v9 = vpop.permute.xlu1 %3243  ;;  %v3588_v10 = vmul.f32 %v3239_v56, %v2724_v57  ;;  %3038 = vperm.xlu0 %4426, %v5764_v5   ;;  %v2262_v21 = vadd.f32 1.0, %v4966_v63  ;;  %v2659_v5 = vld [vmem:[%s5500_s14 + $0xd8] sm:$0xff]  ;;  %v4089_v59 = vmul.f32 -1.442695, %v1453_v41  ;;  %v472_v56 = vld [vmem:[%s5300_s11 + $0x230] sm:$0xff] }
 0x1e1   : > { %v4970_v12 = vpop.eup %4969  ;;  %4991 = vpow2.f32 %v4157_v58  ;;  %v3589_v8 = vmul.f32 %v3244_v9, %v2725_v61  ;;  %3043 = vperm.xlu1 %4425, %v5775_v19   ;;  %v2263_v27 = vadd.f32 1.0, %v4968_v2  ;;  %v5827_v42 = vpop.f32.mrf.mxu0  ;;  %v1738_v57 = vadd.f32 %v5796_v54, %v538_v43  ;;  %v473_v9 = vld [vmem:[%s5300_s11 + $0x238] sm:$0xff] }
 0x1e2   : > { %v4972_v11 = vpop.eup %4971  ;;  %4993 = vrcp.f32 %v2256_v62  ;;  %3733 = vst.msk [vmem:[%s5523_s18 + $0x2e0] sm:$0xff] %vm3640_vm1, %v3588_v10  ;;  %v2334_v6 = vadd.f32 1.0, %v4970_v12  ;;  %v5829_v44 = vpop.f32.mrf.mxu1  ;;  %v4163_v63 = vmul.f32 -1.442695, %v1749_v34 }
 0x1e3   : > { %v4974_v16 = vpop.eup %4973  ;;  %4995 = vrcp.f32 %v2257_v55  ;;  %3734 = vst.msk [vmem:[%s5523_s18 + $0x2e8] sm:$0xff] %vm3640_vm1, %v3589_v8  ;;  %v2909_v19 = vpop.permute.xlu0 %2908  ;;  %v1741_v55 = vadd.f32 %v1740_v20, %v539_v24  ;;  %v4160_v8 = vmul.f32 -1.442695, %v1738_v57 }
 0x1e4   : > { %v4976_v28 = vpop.eup %4975  ;;  %4997 = vrcp.f32 %v2328_v3  ;;  %v2914_v32 = vpop.permute.xlu1 %2913  ;;  %v3522_v35 = vmul.f32 %v2909_v19, %v2658_v13  ;;  %3398 = vperm.xlu0 %4426, %v4972_v11   ;;  %v1474_v13 = vadd.f32 %v5815_v17, %v472_v56  ;;  %v2729_v11 = vld [vmem:[%s5500_s14 + $0x308] sm:$0xff] }
 0x1e5   : > { %4999 = vrcp.f32 %v2329_v15  ;;  %v3523_v36 = vmul.f32 %v2914_v32, %v2659_v5  ;;  %3403 = vperm.xlu1 %4425, %v4974_v16   ;;  %v2335_v37 = vadd.f32 1.0, %v4976_v28  ;;  %v4331_v62 = vpop.f32.mrf.mxu0  ;;  %v5840_v51 = vpop.f32.mrf.mxu1  ;;  %v470_v15 = vld [vmem:[%s5300_s11 + $0x220] sm:$0xff] }
 0x1e6   : > { %5001 = vrcp.f32 %v2262_v21  ;;  %3667 = vst.msk [vmem:[%s5523_s18 + $0xd0] sm:$0xff] %vm3640_vm1, %v3522_v35  ;;  %v4978_v45 = vpop.eup %4977  ;;  %v1477_v26 = vadd.f32 %v4331_v62, %v473_v9  ;;  %v1466_v17 = vadd.f32 %v5827_v42, %v470_v15 }
 0x1e7   : > { %5003 = vrcp.f32 %v2263_v27  ;;  %3668 = vst.msk [vmem:[%s5523_s18 + $0xd8] sm:$0xff] %vm3640_vm1, %v3523_v36  ;;  %v3269_v31 = vpop.permute.xlu0 %3268  ;;  %v1468_v21 = vpop.f32.mrf.mxu0  ;;  %v4161_v27 = vmul.f32 -1.442695, %v1741_v55 }
 0x1e8   : > { %v4980_v48 = vpop.eup %4979  ;;  %5005 = vrcp.f32 %v2334_v6  ;;  %v3274_v50 = vpop.permute.xlu1 %3273  ;;  %v3594_v49 = vmul.f32 %v3269_v31, %v2730_v39  ;;  %3068 = vperm.xlu0 %4426, %v4978_v45   ;;  %v1469_v20 = vadd.f32 %v1468_v21, %v471_v25  ;;  %v4094_v39 = vmul.f32 -1.442695, %v1474_v13  ;;  %v544_v31 = vld [vmem:[%s5300_s11 + $0x470] sm:$0xff] }
 0x1e9   : > { %v4982_v52 = vpop.eup %4981  ;;  %5007 = vpow2.f32 %v4090_v33  ;;  %v3595_v38 = vmul.f32 %v3274_v50, %v2731_v22  ;;  %3073 = vperm.xlu1 %4425, %v4980_v48   ;;  %v5853_v5 = vpop.f32.mrf.mxu1  ;;  %v542_v33 = vld [vmem:[%s5300_s11 + $0x460] sm:$0xff]  ;;  %v543_v22 = vld [vmem:[%s5300_s11 + $0x468] sm:$0xff]  ;;  %v4095_v45 = vmul.f32 -1.442695, %v1477_v26  ;;  %v4092_v34 = vmul.f32 -1.442695, %v1466_v17 }
 0x1ea   : > { %v4984_v58 = vpop.eup %4983  ;;  %5009 = vrcp.f32 %v2335_v37  ;;  %3739 = vst.msk [vmem:[%s5523_s18 + $0x310] sm:$0xff] %vm3640_vm1, %v3594_v49  ;;  %v2260_v3 = vadd.f32 1.0, %v4982_v52  ;;  %v2663_v37 = vld [vmem:[%s5500_s14 + $0xf8] sm:$0xff]  ;;  %v1754_v48 = vadd.f32 %v5840_v51, %v542_v33  ;;  %v4093_v49 = vmul.f32 -1.442695, %v1469_v20  ;;  %v2666_v20 = vld [vmem:[%s5500_s14 + $0x110] sm:$0xff] }
 0x1eb   : > { %v4986_v61 = vpop.eup %4985  ;;  %5011 = vpow2.f32 %v4091_v46  ;;  %3740 = vst.msk [vmem:[%s5523_s18 + $0x318] sm:$0xff] %vm3640_vm1, %v3595_v38  ;;  %v2899_v0 = vpop.permute.xlu0 %2898  ;;  %v2261_v1 = vadd.f32 1.0, %v4984_v58  ;;  %v1762_v62 = vadd.f32 %v5829_v44, %v544_v31 }
 0x1ec   : > { %v4988_v2 = vpop.eup %4987  ;;  %5013 = vpow2.f32 %v4162_v40  ;;  %v2904_v54 = vpop.permute.xlu1 %2903  ;;  %v3520_v7 = vmul.f32 %v2899_v0, %v2656_v53  ;;  %3428 = vperm.xlu0 %4426, %v4986_v61   ;;  %v2734_v53 = vld [vmem:[%s5500_s14 + $0x330] sm:$0xff] }
 0x1ed   : > { %v4990_v10 = vpop.eup %4989  ;;  %5015 = vpow2.f32 %v4088_v47  ;;  %v3521_v12 = vmul.f32 %v2904_v54, %v2657_v60  ;;  %3433 = vperm.xlu1 %4425, %v4988_v2   ;;  %v1756_v41 = vpop.f32.mrf.mxu1  ;;  %v545_v47 = vld [vmem:[%s5300_s11 + $0x478] sm:$0xff] }
 0x1ee   : > { %v4992_v4 = vpop.eup %4991  ;;  %5017 = vpow2.f32 %v4089_v59  ;;  %3665 = vst.msk [vmem:[%s5523_s18 + $0xc0] sm:$0xff] %vm3640_vm1, %v3520_v7  ;;  %v2332_v28 = vadd.f32 1.0, %v4990_v10  ;;  %v1757_v38 = vadd.f32 %v1756_v41, %v543_v22  ;;  %v2735_v59 = vld [vmem:[%s5500_s14 + $0x338] sm:$0xff]  ;;  %v1765_v55 = vadd.f32 %v5853_v5, %v545_v47  ;;  %v2660_v7 = vld [vmem:[%s5500_s14 + $0xe0] sm:$0xff] }
 0x1ef   : > { %v4994_v16 = vpop.eup %4993  ;;  %5019 = vpow2.f32 %v4163_v63  ;;  %3666 = vst.msk [vmem:[%s5523_s18 + $0xc8] sm:$0xff] %vm3640_vm1, %v3521_v12  ;;  %v3259_v18 = vpop.permute.xlu0 %3258  ;;  %v2333_v32 = vadd.f32 1.0, %v4992_v4  ;;  %v4164_v63 = vmul.f32 -1.442695, %v1754_v48  ;;  %v4166_v4 = vmul.f32 -1.442695, %v1762_v62 }
 0x1f0   : > { %v4996_v19 = vpop.eup %4995  ;;  %5021 = vrcp.f32 %v2260_v3  ;;  %v3264_v6 = vpop.permute.xlu1 %3263  ;;  %v3592_v29 = vmul.f32 %v3259_v18, %v2728_v14  ;;  %3058 = vperm.xlu0 %4426, %v4994_v16   ;;  %v4165_v54 = vmul.f32 -1.442695, %v1757_v38  ;;  %v4167_v25 = vmul.f32 -1.442695, %v1765_v55  ;;  %v2732_v16 = vld [vmem:[%s5500_s14 + $0x320] sm:$0xff]  ;;  %v2733_v18 = vld [vmem:[%s5500_s14 + $0x328] sm:$0xff] }
 0x1f1   : > { %v4998_v30 = vpop.eup %4997  ;;  %5023 = vrcp.f32 %v2261_v1  ;;  %v3593_v35 = vmul.f32 %v3264_v6, %v2729_v11  ;;  %3063 = vperm.xlu1 %4425, %v4996_v19   ;;  %v2661_v1 = vld [vmem:[%s5500_s14 + $0xe8] sm:$0xff] }
 0x1f2   : > { %v5000_v36 = vpop.eup %4999  ;;  %5025 = vpow2.f32 %v4160_v8  ;;  %3737 = vst.msk [vmem:[%s5523_s18 + $0x300] sm:$0xff] %vm3640_vm1, %v3592_v29  ;;  %v2665_v62 = vld [vmem:[%s5500_s14 + $0x108] sm:$0xff] }
 0x1f3   : > { %v5002_v42 = vpop.eup %5001  ;;  %5027 = vpow2.f32 %v4161_v27  ;;  %3738 = vst.msk [vmem:[%s5523_s18 + $0x308] sm:$0xff] %vm3640_vm1, %v3593_v35  ;;  %v2929_v46 = vpop.permute.xlu0 %2928 }
 0x1f4   : > { %v5004_v43 = vpop.eup %5003  ;;  %5029 = vrcp.f32 %v2332_v28  ;;  %v2934_v40 = vpop.permute.xlu1 %2933  ;;  %v3526_v24 = vmul.f32 %v2929_v46, %v2662_v23  ;;  %3418 = vperm.xlu0 %4426, %v4998_v30  }
 0x1f5   : > { %v5006_v50 = vpop.eup %5005  ;;  %5031 = vrcp.f32 %v2333_v32  ;;  %v3527_v52 = vmul.f32 %v2934_v40, %v2663_v37  ;;  %3423 = vperm.xlu1 %4425, %v5000_v36   ;;  %v2667_v36 = vld [vmem:[%s5500_s14 + $0x118] sm:$0xff] }
 0x1f6   : > { %v5008_v58 = vpop.eup %5007  ;;  %5033 = vpow2.f32 %v4094_v39  ;;  %3671 = vst.msk [vmem:[%s5523_s18 + $0xf0] sm:$0xff] %vm3640_vm1, %v3526_v24  ;;  %v2739_v40 = vld [vmem:[%s5500_s14 + $0x358] sm:$0xff] }
 0x1f7   : > { %v5010_v57 = vpop.eup %5009  ;;  %v2266_v60 = vadd.f32 1.0, %v5008_v58  ;;  %5035 = vpow2.f32 %v4095_v45  ;;  %3672 = vst.msk [vmem:[%s5523_s18 + $0xf8] sm:$0xff] %vm3640_vm1, %v3527_v52  ;;  %v3289_v51 = vpop.permute.xlu0 %3288 }
 0x1f8   : > { %v5012_v61 = vpop.eup %5011  ;;  %5037 = vpow2.f32 %v4092_v34  ;;  %v3294_v56 = vpop.permute.xlu1 %3293  ;;  %v3598_v0 = vmul.f32 %v3289_v51, %v2734_v53  ;;  %3088 = vperm.xlu0 %4426, %v5002_v42   ;;  %v2738_v34 = vld [vmem:[%s5500_s14 + $0x350] sm:$0xff] }
 0x1f9   : > { %v5014_v2 = vpop.eup %5013  ;;  %v2267_v3 = vadd.f32 1.0, %v5012_v61  ;;  %5039 = vpow2.f32 %v4093_v49  ;;  %v3599_v44 = vmul.f32 %v3294_v56, %v2735_v59  ;;  %3093 = vperm.xlu1 %4425, %v5004_v43   ;;  %v2664_v59 = vld [vmem:[%s5500_s14 + $0x100] sm:$0xff] }
 0x1fa   : > { %v5016_v9 = vpop.eup %5015  ;;  %5041 = vrcp.f32 %v2266_v60  ;;  %v2338_v10 = vadd.f32 1.0, %v5014_v2  ;;  %3743 = vst.msk [vmem:[%s5523_s18 + $0x330] sm:$0xff] %vm3640_vm1, %v3598_v0 }
 0x1fb   : > { %v5018_v12 = vpop.eup %5017  ;;  %5043 = vrcp.f32 %v2267_v3  ;;  %3744 = vst.msk [vmem:[%s5523_s18 + $0x338] sm:$0xff] %vm3640_vm1, %v3599_v44  ;;  %v2919_v15 = vpop.permute.xlu0 %2918  ;;  %v2264_v26 = vadd.f32 1.0, %v5016_v9  ;;  %v2737_v9 = vld [vmem:[%s5500_s14 + $0x348] sm:$0xff] }
 0x1fc   : > { %v5020_v14 = vpop.eup %5019  ;;  %5045 = vpow2.f32 %v4164_v63  ;;  %v2924_v8 = vpop.permute.xlu1 %2923  ;;  %v3524_v13 = vmul.f32 %v2919_v15, %v2660_v7  ;;  %3448 = vperm.xlu0 %4426, %v5006_v50   ;;  %v2265_v28 = vadd.f32 1.0, %v5018_v12 }
 0x1fd   : > { %v5022_v11 = vpop.eup %5021  ;;  %v2339_v21 = vadd.f32 1.0, %v5020_v14  ;;  %5047 = vpow2.f32 %v4165_v54  ;;  %v3525_v5 = vmul.f32 %v2924_v8, %v2661_v1  ;;  %3453 = vperm.xlu1 %4425, %v5010_v57   ;;  %v2736_v54 = vld [vmem:[%s5500_s14 + $0x340] sm:$0xff] }
 0x1fe   : > { %v5024_v27 = vpop.eup %5023  ;;  %5049 = vrcp.f32 %v2338_v10  ;;  %3669 = vst.msk [vmem:[%s5523_s18 + $0xe0] sm:$0xff] %vm3640_vm1, %v3524_v13  ;;  %v2670_v13 = vld [vmem:[%s5500_s14 + $0x130] sm:$0xff] }
 0x1ff   : > { %v5026_v19 = vpop.eup %5025  ;;  %5051 = vrcp.f32 %v2339_v21  ;;  %3670 = vst.msk [vmem:[%s5523_s18 + $0xe8] sm:$0xff] %vm3640_vm1, %v3525_v5  ;;  %v3279_v17 = vpop.permute.xlu0 %3278  ;;  %v2671_v21 = vld [vmem:[%s5500_s14 + $0x138] sm:$0xff] }
 0x200   : > { %v5028_v6 = vpop.eup %5027  ;;  %5053 = vpow2.f32 %v4166_v4  ;;  %v3284_v29 = vpop.permute.xlu1 %3283  ;;  %v3596_v30 = vmul.f32 %v3279_v17, %v2732_v16  ;;  %3078 = vperm.xlu0 %4426, %v5022_v11   ;;  %v2336_v23 = vadd.f32 1.0, %v5026_v19  ;;  %v2743_v17 = vld [vmem:[%s5500_s14 + $0x378] sm:$0xff] }
 0x201   : > { %v5030_v32 = vpop.eup %5029  ;;  %5055 = vpow2.f32 %v4167_v25  ;;  %v3597_v35 = vmul.f32 %v3284_v29, %v2733_v18  ;;  %3083 = vperm.xlu1 %4425, %v5024_v27   ;;  %v2337_v37 = vadd.f32 1.0, %v5028_v6 }
 0x202   : > { %v5032_v33 = vpop.eup %5031  ;;  %5057 = vrcp.f32 %v2264_v26  ;;  %3741 = vst.msk [vmem:[%s5523_s18 + $0x320] sm:$0xff] %vm3640_vm1, %v3596_v30 }
 0x203   : > { %v5034_v39 = vpop.eup %5033  ;;  %5059 = vrcp.f32 %v2265_v28  ;;  %3742 = vst.msk [vmem:[%s5523_s18 + $0x328] sm:$0xff] %vm3640_vm1, %v3597_v35  ;;  %v2949_v41 = vpop.permute.xlu0 %2948  ;;  %v2742_v28 = vld [vmem:[%s5500_s14 + $0x370] sm:$0xff] }
 0x204   : > { %v5036_v22 = vpop.eup %5035  ;;  %v2954_v42 = vpop.permute.xlu1 %2953  ;;  %v3530_v45 = vmul.f32 %v2949_v41, %v2666_v20  ;;  %3438 = vperm.xlu0 %4426, %v5030_v32   ;;  %5061 = vrcp.f32 %v2336_v23  ;;  %v2270_v48 = vadd.f32 1.0, %v5034_v39  ;;  %v2669_v23 = vld [vmem:[%s5500_s14 + $0x128] sm:$0xff] }
 0x205   : > { %v5038_v46 = vpop.eup %5037  ;;  %v3531_v43 = vmul.f32 %v2954_v42, %v2667_v36  ;;  %3443 = vperm.xlu1 %4425, %v5032_v33   ;;  %5063 = vrcp.f32 %v2337_v37  ;;  %v2271_v50 = vadd.f32 1.0, %v5036_v22  ;;  %v2668_v33 = vld [vmem:[%s5500_s14 + $0x120] sm:$0xff] }
 0x206   : > { %v5040_v31 = vpop.eup %5039  ;;  %3675 = vst.msk [vmem:[%s5523_s18 + $0x110] sm:$0xff] %vm3640_vm1, %v3530_v45  ;;  %5065 = vrcp.f32 %v2270_v48  ;;  %v2268_v60 = vadd.f32 1.0, %v5038_v46  ;;  %v2740_v45 = vld [vmem:[%s5500_s14 + $0x360] sm:$0xff]  ;;  %v2741_v46 = vld [vmem:[%s5500_s14 + $0x368] sm:$0xff] }
 0x207   : > { %v5042_v24 = vpop.eup %5041  ;;  %3676 = vst.msk [vmem:[%s5523_s18 + $0x118] sm:$0xff] %vm3640_vm1, %v3531_v43  ;;  %v3309_v49 = vpop.permute.xlu0 %3308  ;;  %5067 = vrcp.f32 %v2271_v50  ;;  %v2269_v61 = vadd.f32 1.0, %v5040_v31  ;;  %v2674_v50 = vld [vmem:[%s5500_s14 + $0x150] sm:$0xff] }
 0x208   : > { %v5044_v52 = vpop.eup %5043  ;;  %v3314_v47 = vpop.permute.xlu1 %3313  ;;  %v3602_v38 = vmul.f32 %v3309_v49, %v2738_v34  ;;  %3108 = vperm.xlu0 %4426, %v5042_v24   ;;  %5069 = vrcp.f32 %v2268_v60  ;;  %v2675_v49 = vld [vmem:[%s5500_s14 + $0x158] sm:$0xff] }
 0x209   : > { %v5046_v53 = vpop.eup %5045  ;;  %v3603_v58 = vmul.f32 %v3314_v47, %v2739_v40  ;;  %3113 = vperm.xlu1 %4425, %v5044_v52   ;;  %5071 = vrcp.f32 %v2269_v61  ;;  %v2747_v60 = vld [vmem:[%s5500_s14 + $0x398] sm:$0xff] }
 0x20a   : > { %v5048_v57 = vpop.eup %5047  ;;  %3747 = vst.msk [vmem:[%s5523_s18 + $0x350] sm:$0xff] %vm3640_vm1, %v3602_v38  ;;  %v2340_v7 = vadd.f32 1.0, %v5046_v53 }
 0x20b   : > { %v5050_v51 = vpop.eup %5049  ;;  %3748 = vst.msk [vmem:[%s5523_s18 + $0x358] sm:$0xff] %vm3640_vm1, %v3603_v58  ;;  %v2939_v63 = vpop.permute.xlu0 %2938  ;;  %v2341_v1 = vadd.f32 1.0, %v5048_v57  ;;  %v2746_v57 = vld [vmem:[%s5500_s14 + $0x390] sm:$0xff] }
 0x20c   : > { %v5052_v55 = vpop.eup %5051  ;;  %v2944_v56 = vpop.permute.xlu1 %2943  ;;  %v3528_v0 = vmul.f32 %v2939_v63, %v2664_v59  ;;  %3468 = vperm.xlu0 %4426, %v5050_v51   ;;  %5073 = vrcp.f32 %v2340_v7  ;;  %v2745_v7 = vld [vmem:[%s5500_s14 + $0x388] sm:$0xff] }
 0x20d   : > { %v5054_v2 = vpop.eup %5053  ;;  %v3529_v3 = vmul.f32 %v2944_v56, %v2665_v62  ;;  %3473 = vperm.xlu1 %4425, %v5052_v55   ;;  %5075 = vrcp.f32 %v2341_v1  ;;  %v2672_v55 = vld [vmem:[%s5500_s14 + $0x140] sm:$0xff]  ;;  %v2673_v56 = vld [vmem:[%s5500_s14 + $0x148] sm:$0xff] }
 0x20e   : > { %v5056_v44 = vpop.eup %5055  ;;  %3673 = vst.msk [vmem:[%s5523_s18 + $0x100] sm:$0xff] %vm3640_vm1, %v3528_v0  ;;  %v2342_v11 = vadd.f32 1.0, %v5054_v2 }
 0x20f   : > { %v5058_v10 = vpop.eup %5057  ;;  %3674 = vst.msk [vmem:[%s5523_s18 + $0x108] sm:$0xff] %vm3640_vm1, %v3529_v3  ;;  %v3299_v12 = vpop.permute.xlu0 %3298  ;;  %v2343_v5 = vadd.f32 1.0, %v5056_v44  ;;  %v2744_v44 = vld [vmem:[%s5500_s14 + $0x380] sm:$0xff] }
 0x210   : > { %v5060_v15 = vpop.eup %5059  ;;  %v3304_v14 = vpop.permute.xlu1 %3303  ;;  %v3600_v4 = vmul.f32 %v3299_v12, %v2736_v54  ;;  %3098 = vperm.xlu0 %4426, %v5058_v10   ;;  %5077 = vrcp.f32 %v2342_v11 }
 0x211   : > { %v3601_v8 = vmul.f32 %v3304_v14, %v2737_v9  ;;  %3103 = vperm.xlu1 %4425, %v5060_v15   ;;  %v5062_v25 = vpop.eup %5061  ;;  %5079 = vrcp.f32 %v2343_v5  ;;  %v2678_v15 = vld [vmem:[%s5500_s14 + $0x170] sm:$0xff]  ;;  %v2679_v14 = vld [vmem:[%s5500_s14 + $0x178] sm:$0xff] }
 0x212   : > { %3745 = vst.msk [vmem:[%s5523_s18 + $0x340] sm:$0xff] %vm3640_vm1, %v3600_v4  ;;  %v5064_v27 = vpop.eup %5063 }
 0x213   : > { %3746 = vst.msk [vmem:[%s5523_s18 + $0x348] sm:$0xff] %vm3640_vm1, %v3601_v8  ;;  %v2969_v16 = vpop.permute.xlu0 %2968  ;;  %v5066_v6 = vpop.eup %5065 }
 0x214   : > { %v2974_v26 = vpop.permute.xlu1 %2973  ;;  %v3534_v18 = vmul.f32 %v2969_v16, %v2670_v13  ;;  %3458 = vperm.xlu0 %4426, %v5062_v25   ;;  %v5068_v30 = vpop.eup %5067  ;;  %v2751_v25 = vld [vmem:[%s5500_s14 + $0x3b8] sm:$0xff] }
 0x215   : > { %v3535_v19 = vmul.f32 %v2974_v26, %v2671_v21  ;;  %3463 = vperm.xlu1 %4425, %v5064_v27   ;;  %v5070_v36 = vpop.eup %5069  ;;  %v2750_v21 = vld [vmem:[%s5500_s14 + $0x3b0] sm:$0xff] }
 0x216   : > { %3679 = vst.msk [vmem:[%s5523_s18 + $0x130] sm:$0xff] %vm3640_vm1, %v3534_v18  ;;  %v5072_v37 = vpop.eup %5071  ;;  %v2676_v18 = vld [vmem:[%s5500_s14 + $0x160] sm:$0xff] }
 0x217   : > { %3680 = vst.msk [vmem:[%s5523_s18 + $0x138] sm:$0xff] %vm3640_vm1, %v3535_v19  ;;  %v3329_v29 = vpop.permute.xlu0 %3328  ;;  %v2677_v19 = vld [vmem:[%s5500_s14 + $0x168] sm:$0xff] }
 0x218   : > { %v3334_v32 = vpop.permute.xlu1 %3333  ;;  %v3606_v35 = vmul.f32 %v3329_v29, %v2742_v28  ;;  %3128 = vperm.xlu0 %4426, %v5066_v6  }
 0x219   : > { %v3607_v20 = vmul.f32 %v3334_v32, %v2743_v17  ;;  %3133 = vperm.xlu1 %4425, %v5068_v30   ;;  %v5074_v43 = vpop.eup %5073  ;;  %v2748_v30 = vld [vmem:[%s5500_s14 + $0x3a0] sm:$0xff]  ;;  %v2749_v32 = vld [vmem:[%s5500_s14 + $0x3a8] sm:$0xff] }
 0x21a   : > { %3751 = vst.msk [vmem:[%s5523_s18 + $0x370] sm:$0xff] %vm3640_vm1, %v3606_v35  ;;  %v5076_v31 = vpop.eup %5075 }
 0x21b   : > { %3752 = vst.msk [vmem:[%s5523_s18 + $0x378] sm:$0xff] %vm3640_vm1, %v3607_v20  ;;  %v2959_v39 = vpop.permute.xlu0 %2958 }
 0x21c   : > { %v2964_v41 = vpop.permute.xlu1 %2963  ;;  %v3532_v22 = vmul.f32 %v2959_v39, %v2668_v33  ;;  %3118 = vperm.xlu0 %4426, %v5070_v36   ;;  %v2682_v36 = vld [vmem:[%s5500_s14 + $0x190] sm:$0xff]  ;;  %v2683_v39 = vld [vmem:[%s5500_s14 + $0x198] sm:$0xff] }
 0x21d   : > { %v3533_v42 = vmul.f32 %v2964_v41, %v2669_v23  ;;  %3123 = vperm.xlu1 %4425, %v5072_v37   ;;  %v5078_v52 = vpop.eup %5077 }
 0x21e   : > { %3677 = vst.msk [vmem:[%s5523_s18 + $0x120] sm:$0xff] %vm3640_vm1, %v3532_v22  ;;  %v5080_v38 = vpop.eup %5079 }
 0x21f   : > { %3678 = vst.msk [vmem:[%s5523_s18 + $0x128] sm:$0xff] %vm3640_vm1, %v3533_v42  ;;  %v3319_v34 = vpop.permute.xlu0 %3318 }
 0x220   : > { %v3324_v48 = vpop.permute.xlu1 %3323  ;;  %v3604_v40 = vmul.f32 %v3319_v34, %v2740_v45  ;;  %3478 = vperm.xlu0 %4426, %v5074_v43   ;;  %v2754_v45 = vld [vmem:[%s5500_s14 + $0x3d0] sm:$0xff] }
 0x221   : > { %v3605_v24 = vmul.f32 %v3324_v48, %v2741_v46  ;;  %3483 = vperm.xlu1 %4425, %v5076_v31   ;;  %v2755_v46 = vld [vmem:[%s5500_s14 + $0x3d8] sm:$0xff] }
 0x222   : > { %3749 = vst.msk [vmem:[%s5523_s18 + $0x360] sm:$0xff] %vm3640_vm1, %v3604_v40  ;;  %v2680_v40 = vld [vmem:[%s5500_s14 + $0x180] sm:$0xff] }
 0x223   : > { %3750 = vst.msk [vmem:[%s5523_s18 + $0x368] sm:$0xff] %vm3640_vm1, %v3605_v24  ;;  %v2989_v47 = vpop.permute.xlu0 %2988  ;;  %v2681_v24 = vld [vmem:[%s5500_s14 + $0x188] sm:$0xff] }
 0x224   : > { %v2994_v53 = vpop.permute.xlu1 %2993  ;;  %v3538_v58 = vmul.f32 %v2989_v47, %v2674_v50  ;;  %3488 = vperm.xlu0 %4426, %v5078_v52  }
 0x225   : > { %v3539_v59 = vmul.f32 %v2994_v53, %v2675_v49  ;;  %3493 = vperm.xlu1 %4425, %v5080_v38   ;;  %v2752_v38 = vld [vmem:[%s5500_s14 + $0x3c0] sm:$0xff]  ;;  %v2753_v53 = vld [vmem:[%s5500_s14 + $0x3c8] sm:$0xff] }
 0x226   : > { %3683 = vst.msk [vmem:[%s5523_s18 + $0x150] sm:$0xff] %vm3640_vm1, %v3538_v58 }
 0x227   : > { %3684 = vst.msk [vmem:[%s5523_s18 + $0x158] sm:$0xff] %vm3640_vm1, %v3539_v59  ;;  %v3349_v62 = vpop.permute.xlu0 %3348 }
 0x228   : > { %v3354_v51 = vpop.permute.xlu1 %3353  ;;  %v3610_v61 = vmul.f32 %v3349_v62, %v2746_v57  ;;  %v2686_v62 = vld [vmem:[%s5500_s14 + $0x1b0] sm:$0xff] }
 0x229   : > { %v3611_v63 = vmul.f32 %v3354_v51, %v2747_v60  ;;  %v2687_v51 = vld [vmem:[%s5500_s14 + $0x1b8] sm:$0xff] }
 0x22a   : > { %3755 = vst.msk [vmem:[%s5523_s18 + $0x390] sm:$0xff] %vm3640_vm1, %v3610_v61 }
 0x22b   : > { %3756 = vst.msk [vmem:[%s5523_s18 + $0x398] sm:$0xff] %vm3640_vm1, %v3611_v63  ;;  %v2979_v0 = vpop.permute.xlu0 %2978 }
 0x22c   : > { %v2984_v2 = vpop.permute.xlu1 %2983  ;;  %v3536_v3 = vmul.f32 %v2979_v0, %v2672_v55  ;;  %v2758_v0 = vld [vmem:[%s5500_s14 + $0x3f0] sm:$0xff] }
 0x22d   : > { %v3537_v54 = vmul.f32 %v2984_v2, %v2673_v56  ;;  %v2759_v2 = vld [vmem:[%s5500_s14 + $0x3f8] sm:$0xff] }
 0x22e   : > { %3681 = vst.msk [vmem:[%s5523_s18 + $0x140] sm:$0xff] %vm3640_vm1, %v3536_v3 }
 0x22f   : > { %3682 = vst.msk [vmem:[%s5523_s18 + $0x148] sm:$0xff] %vm3640_vm1, %v3537_v54  ;;  %v3339_v9 = vpop.permute.xlu0 %3338 }
 0x230   : > { %v3344_v10 = vpop.permute.xlu1 %3343  ;;  %v3608_v1 = vmul.f32 %v3339_v9, %v2744_v44  ;;  %v2684_v9 = vld [vmem:[%s5500_s14 + $0x1a0] sm:$0xff] }
 0x231   : > { %v3609_v12 = vmul.f32 %v3344_v10, %v2745_v7  ;;  %v2685_v10 = vld [vmem:[%s5500_s14 + $0x1a8] sm:$0xff] }
 0x232   : > { %3753 = vst.msk [vmem:[%s5523_s18 + $0x380] sm:$0xff] %vm3640_vm1, %v3608_v1 }
 0x233   : > { %3754 = vst.msk [vmem:[%s5523_s18 + $0x388] sm:$0xff] %vm3640_vm1, %v3609_v12  ;;  %v3009_v4 = vpop.permute.xlu0 %3008 }
 0x234   : > { %v3014_v8 = vpop.permute.xlu1 %3013  ;;  %v3542_v13 = vmul.f32 %v3009_v4, %v2678_v15  ;;  %v2756_v4 = vld [vmem:[%s5500_s14 + $0x3e0] sm:$0xff] }
 0x235   : > { %v3543_v11 = vmul.f32 %v3014_v8, %v2679_v14  ;;  %v2757_v8 = vld [vmem:[%s5500_s14 + $0x3e8] sm:$0xff] }
 0x236   : > { %3687 = vst.msk [vmem:[%s5523_s18 + $0x170] sm:$0xff] %vm3640_vm1, %v3542_v13 }
 0x237   : > { %3688 = vst.msk [vmem:[%s5523_s18 + $0x178] sm:$0xff] %vm3640_vm1, %v3543_v11  ;;  %v3369_v5 = vpop.permute.xlu0 %3368 }
 0x238   : > { %v3374_v16 = vpop.permute.xlu1 %3373  ;;  %v3614_v27 = vmul.f32 %v3369_v5, %v2750_v21  ;;  %v2690_v5 = vld [vmem:[%s5500_s14 + $0x1d0] sm:$0xff] }
 0x239   : > { %v3615_v26 = vmul.f32 %v3374_v16, %v2751_v25  ;;  %v2691_v16 = vld [vmem:[%s5500_s14 + $0x1d8] sm:$0xff] }
 0x23a   : > { %3759 = vst.msk [vmem:[%s5523_s18 + $0x3b0] sm:$0xff] %vm3640_vm1, %v3614_v27 }
 0x23b   : > { %3760 = vst.msk [vmem:[%s5523_s18 + $0x3b8] sm:$0xff] %vm3640_vm1, %v3615_v26  ;;  %v2999_v28 = vpop.permute.xlu0 %2998 }
 0x23c   : > { %v3004_v17 = vpop.permute.xlu1 %3003  ;;  %v3540_v6 = vmul.f32 %v2999_v28, %v2676_v18  ;;  %v2762_v28 = vld [vmem:[%s5500_s14 + $0x410] sm:$0xff] }
 0x23d   : > { %v3541_v29 = vmul.f32 %v3004_v17, %v2677_v19  ;;  %v2763_v17 = vld [vmem:[%s5500_s14 + $0x418] sm:$0xff] }
 0x23e   : > { %3685 = vst.msk [vmem:[%s5523_s18 + $0x160] sm:$0xff] %vm3640_vm1, %v3540_v6 }
 0x23f   : > { %3686 = vst.msk [vmem:[%s5523_s18 + $0x168] sm:$0xff] %vm3640_vm1, %v3541_v29  ;;  %v3359_v35 = vpop.permute.xlu0 %3358 }
 0x240   : > { %v3364_v20 = vpop.permute.xlu1 %3363  ;;  %v3612_v33 = vmul.f32 %v3359_v35, %v2748_v30  ;;  %v2688_v35 = vld [vmem:[%s5500_s14 + $0x1c0] sm:$0xff] }
 0x241   : > { %v3613_v23 = vmul.f32 %v3364_v20, %v2749_v32  ;;  %v2689_v20 = vld [vmem:[%s5500_s14 + $0x1c8] sm:$0xff] }
 0x242   : > { %3757 = vst.msk [vmem:[%s5523_s18 + $0x3a0] sm:$0xff] %vm3640_vm1, %v3612_v33 }
 0x243   : > { %3758 = vst.msk [vmem:[%s5523_s18 + $0x3a8] sm:$0xff] %vm3640_vm1, %v3613_v23  ;;  %v3029_v37 = vpop.permute.xlu0 %3028 }
 0x244   : > { %v3034_v41 = vpop.permute.xlu1 %3033  ;;  %v3546_v22 = vmul.f32 %v3029_v37, %v2682_v36  ;;  %v2760_v37 = vld [vmem:[%s5500_s14 + $0x400] sm:$0xff] }
 0x245   : > { %v3547_v42 = vmul.f32 %v3034_v41, %v2683_v39  ;;  %v2761_v41 = vld [vmem:[%s5500_s14 + $0x408] sm:$0xff] }
 0x246   : > { %3691 = vst.msk [vmem:[%s5523_s18 + $0x190] sm:$0xff] %vm3640_vm1, %v3546_v22 }
 0x247   : > { %3692 = vst.msk [vmem:[%s5523_s18 + $0x198] sm:$0xff] %vm3640_vm1, %v3547_v42  ;;  %v3389_v43 = vpop.permute.xlu0 %3388 }
 0x248   : > { %v3394_v34 = vpop.permute.xlu1 %3393  ;;  %v3618_v31 = vmul.f32 %v3389_v43, %v2754_v45  ;;  %v2694_v43 = vld [vmem:[%s5500_s14 + $0x1f0] sm:$0xff] }
 0x249   : > { %v3619_v48 = vmul.f32 %v3394_v34, %v2755_v46  ;;  %v2695_v34 = vld [vmem:[%s5500_s14 + $0x1f8] sm:$0xff] }
 0x24a   : > { %3763 = vst.msk [vmem:[%s5523_s18 + $0x3d0] sm:$0xff] %vm3640_vm1, %v3618_v31 }
 0x24b   : > { %3764 = vst.msk [vmem:[%s5523_s18 + $0x3d8] sm:$0xff] %vm3640_vm1, %v3619_v48  ;;  %v3019_v50 = vpop.permute.xlu0 %3018 }
 0x24c   : > { %v3024_v49 = vpop.permute.xlu1 %3023  ;;  %v3544_v52 = vmul.f32 %v3019_v50, %v2680_v40  ;;  %v2766_v50 = vld [vmem:[%s5500_s14 + $0x430] sm:$0xff] }
 0x24d   : > { %v3545_v47 = vmul.f32 %v3024_v49, %v2681_v24  ;;  %v2767_v49 = vld [vmem:[%s5500_s14 + $0x438] sm:$0xff] }
 0x24e   : > { %3689 = vst.msk [vmem:[%s5523_s18 + $0x180] sm:$0xff] %vm3640_vm1, %v3544_v52 }
 0x24f   : > { %3690 = vst.msk [vmem:[%s5523_s18 + $0x188] sm:$0xff] %vm3640_vm1, %v3545_v47  ;;  %v3379_v58 = vpop.permute.xlu0 %3378 }
 0x250   : > { %v3384_v59 = vpop.permute.xlu1 %3383  ;;  %v3616_v57 = vmul.f32 %v3379_v58, %v2752_v38  ;;  %v2692_v58 = vld [vmem:[%s5500_s14 + $0x1e0] sm:$0xff] }
 0x251   : > { %v3617_v60 = vmul.f32 %v3384_v59, %v2753_v53  ;;  %v2693_v59 = vld [vmem:[%s5500_s14 + $0x1e8] sm:$0xff] }
 0x252   : > { %3761 = vst.msk [vmem:[%s5523_s18 + $0x3c0] sm:$0xff] %vm3640_vm1, %v3616_v57 }
 0x253   : > { %3762 = vst.msk [vmem:[%s5523_s18 + $0x3c8] sm:$0xff] %vm3640_vm1, %v3617_v60  ;;  %v3049_v61 = vpop.permute.xlu0 %3048 }
 0x254   : > { %v3054_v63 = vpop.permute.xlu1 %3053  ;;  %v3550_v55 = vmul.f32 %v3049_v61, %v2686_v62  ;;  %v2764_v61 = vld [vmem:[%s5500_s14 + $0x420] sm:$0xff] }
 0x255   : > { %v3551_v56 = vmul.f32 %v3054_v63, %v2687_v51  ;;  %v2765_v63 = vld [vmem:[%s5500_s14 + $0x428] sm:$0xff] }
 0x256   : > { %3695 = vst.msk [vmem:[%s5523_s18 + $0x1b0] sm:$0xff] %vm3640_vm1, %v3550_v55 }
 0x257   : > { %3696 = vst.msk [vmem:[%s5523_s18 + $0x1b8] sm:$0xff] %vm3640_vm1, %v3551_v56  ;;  %v3409_v3 = vpop.permute.xlu0 %3408 }
 0x258   : > { %v3414_v54 = vpop.permute.xlu1 %3413  ;;  %v3622_v44 = vmul.f32 %v3409_v3, %v2758_v0  ;;  %v2698_v3 = vld [vmem:[%s5500_s14 + $0x210] sm:$0xff] }
 0x259   : > { %v3623_v7 = vmul.f32 %v3414_v54, %v2759_v2  ;;  %v2699_v54 = vld [vmem:[%s5500_s14 + $0x218] sm:$0xff] }
 0x25a   : > { %3767 = vst.msk [vmem:[%s5523_s18 + $0x3f0] sm:$0xff] %vm3640_vm1, %v3622_v44 }
 0x25b   : > { %3768 = vst.msk [vmem:[%s5523_s18 + $0x3f8] sm:$0xff] %vm3640_vm1, %v3623_v7  ;;  %v3039_v1 = vpop.permute.xlu0 %3038 }
 0x25c   : > { %v3044_v12 = vpop.permute.xlu1 %3043  ;;  %v3548_v15 = vmul.f32 %v3039_v1, %v2684_v9  ;;  %v2770_v1 = vld [vmem:[%s5500_s14 + $0x450] sm:$0xff] }
 0x25d   : > { %v3549_v14 = vmul.f32 %v3044_v12, %v2685_v10  ;;  %v2771_v12 = vld [vmem:[%s5500_s14 + $0x458] sm:$0xff] }
 0x25e   : > { %3693 = vst.msk [vmem:[%s5523_s18 + $0x1a0] sm:$0xff] %vm3640_vm1, %v3548_v15 }
 0x25f   : > { %3694 = vst.msk [vmem:[%s5523_s18 + $0x1a8] sm:$0xff] %vm3640_vm1, %v3549_v14  ;;  %v3399_v13 = vpop.permute.xlu0 %3398 }
 0x260   : > { %v3404_v11 = vpop.permute.xlu1 %3403  ;;  %v3620_v21 = vmul.f32 %v3399_v13, %v2756_v4  ;;  %v2696_v13 = vld [vmem:[%s5500_s14 + $0x200] sm:$0xff] }
 0x261   : > { %v3621_v25 = vmul.f32 %v3404_v11, %v2757_v8  ;;  %v2697_v11 = vld [vmem:[%s5500_s14 + $0x208] sm:$0xff] }
 0x262   : > { %3765 = vst.msk [vmem:[%s5523_s18 + $0x3e0] sm:$0xff] %vm3640_vm1, %v3620_v21 }
 0x263   : > { %3766 = vst.msk [vmem:[%s5523_s18 + $0x3e8] sm:$0xff] %vm3640_vm1, %v3621_v25  ;;  %v3069_v27 = vpop.permute.xlu0 %3068 }
 0x264   : > { %v3074_v26 = vpop.permute.xlu1 %3073  ;;  %v3554_v18 = vmul.f32 %v3069_v27, %v2690_v5  ;;  %v2768_v27 = vld [vmem:[%s5500_s14 + $0x440] sm:$0xff] }
 0x265   : > { %v3555_v19 = vmul.f32 %v3074_v26, %v2691_v16  ;;  %v2769_v26 = vld [vmem:[%s5500_s14 + $0x448] sm:$0xff] }
 0x266   : > { %3699 = vst.msk [vmem:[%s5523_s18 + $0x1d0] sm:$0xff] %vm3640_vm1, %v3554_v18 }
 0x267   : > { %3700 = vst.msk [vmem:[%s5523_s18 + $0x1d8] sm:$0xff] %vm3640_vm1, %v3555_v19  ;;  %v3429_v6 = vpop.permute.xlu0 %3428 }
 0x268   : > { %v3434_v29 = vpop.permute.xlu1 %3433  ;;  %v3626_v30 = vmul.f32 %v3429_v6, %v2762_v28  ;;  %v2702_v6 = vld [vmem:[%s5500_s14 + $0x230] sm:$0xff] }
 0x269   : > { %v3627_v32 = vmul.f32 %v3434_v29, %v2763_v17  ;;  %v2703_v29 = vld [vmem:[%s5500_s14 + $0x238] sm:$0xff] }
 0x26a   : > { %3771 = vst.msk [vmem:[%s5523_s18 + $0x410] sm:$0xff] %vm3640_vm1, %v3626_v30 }
 0x26b   : > { %3772 = vst.msk [vmem:[%s5523_s18 + $0x418] sm:$0xff] %vm3640_vm1, %v3627_v32  ;;  %v3059_v33 = vpop.permute.xlu0 %3058 }
 0x26c   : > { %v3064_v23 = vpop.permute.xlu1 %3063  ;;  %v3552_v36 = vmul.f32 %v3059_v33, %v2688_v35  ;;  %v2700_v33 = vld [vmem:[%s5500_s14 + $0x220] sm:$0xff] }
 0x26d   : > { %v3553_v39 = vmul.f32 %v3064_v23, %v2689_v20  ;;  %v2701_v23 = vld [vmem:[%s5500_s14 + $0x228] sm:$0xff] }
 0x26e   : > { %3697 = vst.msk [vmem:[%s5523_s18 + $0x1c0] sm:$0xff] %vm3640_vm1, %v3552_v36 }
 0x26f   : > { %3698 = vst.msk [vmem:[%s5523_s18 + $0x1c8] sm:$0xff] %vm3640_vm1, %v3553_v39  ;;  %v3419_v22 = vpop.permute.xlu0 %3418 }
 0x270   : > { %v3424_v42 = vpop.permute.xlu1 %3423  ;;  %v3624_v45 = vmul.f32 %v3419_v22, %v2760_v37  ;;  %v2772_v22 = vld [vmem:[%s5500_s14 + $0x460] sm:$0xff] }
 0x271   : > { %v3625_v46 = vmul.f32 %v3424_v42, %v2761_v41  ;;  %v2773_v42 = vld [vmem:[%s5500_s14 + $0x468] sm:$0xff] }
 0x272   : > { %3769 = vst.msk [vmem:[%s5523_s18 + $0x400] sm:$0xff] %vm3640_vm1, %v3624_v45 }
 0x273   : > { %3770 = vst.msk [vmem:[%s5523_s18 + $0x408] sm:$0xff] %vm3640_vm1, %v3625_v46  ;;  %v3089_v31 = vpop.permute.xlu0 %3088 }
 0x274   : > { %v3094_v48 = vpop.permute.xlu1 %3093  ;;  %v3558_v40 = vmul.f32 %v3089_v31, %v2694_v43  ;;  %v2774_v31 = vld [vmem:[%s5500_s14 + $0x470] sm:$0xff] }
 0x275   : > { %v3559_v24 = vmul.f32 %v3094_v48, %v2695_v34  ;;  %v2775_v48 = vld [vmem:[%s5500_s14 + $0x478] sm:$0xff] }
 0x276   : > { %3703 = vst.msk [vmem:[%s5523_s18 + $0x1f0] sm:$0xff] %vm3640_vm1, %v3558_v40 }
 0x277   : > { %3704 = vst.msk [vmem:[%s5523_s18 + $0x1f8] sm:$0xff] %vm3640_vm1, %v3559_v24  ;;  %v3449_v52 = vpop.permute.xlu0 %3448 }
 0x278   : > { %v3454_v47 = vpop.permute.xlu1 %3453  ;;  %v3630_v38 = vmul.f32 %v3449_v52, %v2766_v50 }
 0x279   : > { %v3631_v53 = vmul.f32 %v3454_v47, %v2767_v49 }
 0x27a   : > { %3775 = vst.msk [vmem:[%s5523_s18 + $0x430] sm:$0xff] %vm3640_vm1, %v3630_v38 }
 0x27b   : > { %3776 = vst.msk [vmem:[%s5523_s18 + $0x438] sm:$0xff] %vm3640_vm1, %v3631_v53  ;;  %v3079_v57 = vpop.permute.xlu0 %3078 }
 0x27c   : > { %v3084_v60 = vpop.permute.xlu1 %3083  ;;  %v3556_v62 = vmul.f32 %v3079_v57, %v2692_v58 }
 0x27d   : > { %v3557_v51 = vmul.f32 %v3084_v60, %v2693_v59 }
 0x27e   : > { %3701 = vst.msk [vmem:[%s5523_s18 + $0x1e0] sm:$0xff] %vm3640_vm1, %v3556_v62 }
 0x27f   : > { %3702 = vst.msk [vmem:[%s5523_s18 + $0x1e8] sm:$0xff] %vm3640_vm1, %v3557_v51  ;;  %v3439_v55 = vpop.permute.xlu0 %3438 }
 0x280   : > { %v3444_v56 = vpop.permute.xlu1 %3443  ;;  %v3628_v0 = vmul.f32 %v3439_v55, %v2764_v61 }
 0x281   : > { %v3629_v2 = vmul.f32 %v3444_v56, %v2765_v63 }
 0x282   : > { %3773 = vst.msk [vmem:[%s5523_s18 + $0x420] sm:$0xff] %vm3640_vm1, %v3628_v0 }
 0x283   : > { %3774 = vst.msk [vmem:[%s5523_s18 + $0x428] sm:$0xff] %vm3640_vm1, %v3629_v2  ;;  %v3109_v44 = vpop.permute.xlu0 %3108 }
 0x284   : > { %v3114_v7 = vpop.permute.xlu1 %3113  ;;  %v3562_v9 = vmul.f32 %v3109_v44, %v2698_v3 }
 0x285   : > { %v3563_v10 = vmul.f32 %v3114_v7, %v2699_v54 }
 0x286   : > { %3707 = vst.msk [vmem:[%s5523_s18 + $0x210] sm:$0xff] %vm3640_vm1, %v3562_v9 }
 0x287   : > { %3708 = vst.msk [vmem:[%s5523_s18 + $0x218] sm:$0xff] %vm3640_vm1, %v3563_v10  ;;  %v3469_v15 = vpop.permute.xlu0 %3468 }
 0x288   : > { %v3474_v14 = vpop.permute.xlu1 %3473  ;;  %v3634_v4 = vmul.f32 %v3469_v15, %v2770_v1 }
 0x289   : > { %v3635_v8 = vmul.f32 %v3474_v14, %v2771_v12 }
 0x28a   : > { %3779 = vst.msk [vmem:[%s5523_s18 + $0x450] sm:$0xff] %vm3640_vm1, %v3634_v4 }
 0x28b   : > { %3780 = vst.msk [vmem:[%s5523_s18 + $0x458] sm:$0xff] %vm3640_vm1, %v3635_v8  ;;  %v3099_v21 = vpop.permute.xlu0 %3098 }
 0x28c   : > { %v3104_v25 = vpop.permute.xlu1 %3103  ;;  %v3560_v5 = vmul.f32 %v3099_v21, %v2696_v13 }
 0x28d   : > { %v3561_v16 = vmul.f32 %v3104_v25, %v2697_v11 }
 0x28e   : > { %3705 = vst.msk [vmem:[%s5523_s18 + $0x200] sm:$0xff] %vm3640_vm1, %v3560_v5 }
 0x28f   : > { %3706 = vst.msk [vmem:[%s5523_s18 + $0x208] sm:$0xff] %vm3640_vm1, %v3561_v16  ;;  %v3459_v18 = vpop.permute.xlu0 %3458 }
 0x290   : > { %v3464_v19 = vpop.permute.xlu1 %3463  ;;  %v3632_v28 = vmul.f32 %v3459_v18, %v2768_v27 }
 0x291   : > { %v3633_v17 = vmul.f32 %v3464_v19, %v2769_v26 }
 0x292   : > { %3777 = vst.msk [vmem:[%s5523_s18 + $0x440] sm:$0xff] %vm3640_vm1, %v3632_v28 }
 0x293   : > { %3778 = vst.msk [vmem:[%s5523_s18 + $0x448] sm:$0xff] %vm3640_vm1, %v3633_v17  ;;  %v3129_v30 = vpop.permute.xlu0 %3128 }
 0x294   : > { %v3134_v32 = vpop.permute.xlu1 %3133  ;;  %v3566_v35 = vmul.f32 %v3129_v30, %v2702_v6 }
 0x295   : > { %v3567_v20 = vmul.f32 %v3134_v32, %v2703_v29 }
 0x296   : > { %3711 = vst.msk [vmem:[%s5523_s18 + $0x230] sm:$0xff] %vm3640_vm1, %v3566_v35 }
 0x297   : > { %3712 = vst.msk [vmem:[%s5523_s18 + $0x238] sm:$0xff] %vm3640_vm1, %v3567_v20  ;;  %v3119_v36 = vpop.permute.xlu0 %3118 }
 0x298   : > { %v3124_v39 = vpop.permute.xlu1 %3123  ;;  %v3564_v37 = vmul.f32 %v3119_v36, %v2700_v33 }
 0x299   : > { %v3565_v41 = vmul.f32 %v3124_v39, %v2701_v23 }
 0x29a   : > { %3709 = vst.msk [vmem:[%s5523_s18 + $0x220] sm:$0xff] %vm3640_vm1, %v3564_v37 }
 0x29b   : > { %3710 = vst.msk [vmem:[%s5523_s18 + $0x228] sm:$0xff] %vm3640_vm1, %v3565_v41  ;;  %v3479_v45 = vpop.permute.xlu0 %3478 }
 0x29c   : > { %v3484_v46 = vpop.permute.xlu1 %3483  ;;  %v3636_v43 = vmul.f32 %v3479_v45, %v2772_v22 }
 0x29d   : > { %v3637_v34 = vmul.f32 %v3484_v46, %v2773_v42 }
 0x29e   : > { %3781 = vst.msk [vmem:[%s5523_s18 + $0x460] sm:$0xff] %vm3640_vm1, %v3636_v43 }
 0x29f   : > { %3782 = vst.msk [vmem:[%s5523_s18 + $0x468] sm:$0xff] %vm3640_vm1, %v3637_v34  ;;  %v3489_v40 = vpop.permute.xlu0 %3488 }
 0x2a0   : > { %v3494_v24 = vpop.permute.xlu1 %3493  ;;  %v3638_v50 = vmul.f32 %v3489_v40, %v2774_v31 }
 0x2a1   : > { %v3639_v49 = vmul.f32 %v3494_v24, %v2775_v48 }
 0x2a2   : > { %3783 = vst.msk [vmem:[%s5523_s18 + $0x470] sm:$0xff] %vm3640_vm1, %v3638_v50 }
 0x2a3   : > { %3784 = vst.msk [vmem:[%s5523_s18 + $0x478] sm:$0xff] %vm3640_vm1, %v3639_v49 }
 0x2a4 PF: > { %s14_s15 = sadd.s32 1, %s5087_s15  }
 0x2a5   : > { %p11_p4 = scmp.ge.s32.totalorder %s14_s15, 4  }
 0x2a7   :  { %13 = sbr.rel (!%p11_p4) target bundleno = 1 (0x1), region = 72 }

</bundles_post_ra>
